<compile_context>
chip_gen: v6e
topology: v6e:2x2x1
jax: 0.10.0
libtpu: 0.0.40
codegen_flags: <defaults>
</compile_context>

<pallas_src>
import jax
import jax.numpy as jnp
from jax.experimental import pallas as pl
from jax.experimental.pallas import tpu as pltpu

LANE = 128


def _round_up(v, m):
    return (v + m - 1) // m * m


# ------------------------------ Pallas kernel --------------------------------

def _rgcn_fused_kernel(x_ref, fw_ref, fb_ref, a_ref, invdeg_ref,
                       wroot_ref, wrel_ref, b_ref, o_ref,
                       h_ref, msgs_ref):
    # x:      [Np, Fp]          bf16   padded node features                 (resident)
    # fw:     [Fp, Dp]          bf16   initial Linear weight (transposed)   (resident)
    # fb:     [1,  Dp]          f32    initial Linear bias                  (resident)
    # a:      [R*Np, TK]        int8   per-relation edge COUNTS, K tile     (streamed)
    # invdeg: [R*Np, 1]         f32    exact 1/deg per (relation, dst node) (resident)
    # wroot:  [1, Dp, Dp]       bf16   current layer's root weight
    # wrel:   [1, R, Dp, Dp]    bf16   current layer's relation weights
    # b:      [1, 1, Dp]        f32    current layer's bias
    # o:      [Np, Dp]          bf16
    # h:      [Np, Dp]          f32    VMEM scratch, persists across layers
    # msgs:   [R*Np, Dp]        f32    VMEM scratch, accumulates over K tiles
    l = pl.program_id(0)
    k = pl.program_id(1)
    nl = pl.num_programs(0)
    nk = pl.num_programs(1)
    n, dp = h_ref.shape
    tk = a_ref.shape[1]
    num_rel = wrel_ref.shape[1]

    # Initial Linear + ReLU, exactly once.
    @pl.when((l == 0) & (k == 0))
    def _():
        h0 = jnp.dot(x_ref[...], fw_ref[...], preferred_element_type=jnp.float32)
        h_ref[...] = jnp.maximum(h0 + fb_ref[...], 0.0)

    # Zero the message accumulator at the start of each layer.
    @pl.when(k == 0)
    def _():
        msgs_ref[...] = jnp.zeros_like(msgs_ref)

    # Neighbor-sum for the current source (K) tile, all relations in ONE matmul:
    #   msgs[R*Np, Dp] += counts[R*Np, TK] @ h[k_tile][TK, Dp]
    start = pl.multiple_of(k * tk, tk)
    h_k = h_ref[pl.ds(start, tk), :].astype(jnp.bfloat16)
    # int8 counts -> f32 -> bf16 (exact for small counts); MXU runs bf16.
    a_tile = a_ref[...].astype(jnp.float32).astype(jnp.bfloat16)
    msgs_ref[...] += jnp.dot(a_tile, h_k, preferred_element_type=jnp.float32)

    # Layer finalize: f32 mean normalization, root + relation projections, ReLU.
    @pl.when(k == nk - 1)
    def _():
        h_bf = h_ref[...].astype(jnp.bfloat16)
        acc = jnp.dot(h_bf, wroot_ref[0], preferred_element_type=jnp.float32)
        acc = acc + b_ref[0]
        for r in range(num_rel):  # static, small (R = 2)
            m = msgs_ref[pl.ds(r * n, n), :] * invdeg_ref[pl.ds(r * n, n), :]
            acc = acc + jnp.dot(m.astype(jnp.bfloat16), wrel_ref[0, r],
                                preferred_element_type=jnp.float32)
        h_new = jnp.maximum(acc, 0.0)
        h_ref[...] = h_new
        # Cheap per-layer VMEM store; HBM writeback happens once at grid end
        # (output block index is constant).  Last layer's value wins.
        o_ref[...] = h_new.astype(o_ref.dtype)


# ------------------------------ pallas_call wrapper ---------------------------

def _pick_tk(np_, num_rel, budget_bytes=8 << 20):
    # Largest K tile (multiple of 128, dividing Np) whose int8 A tile fits budget.
    m = np_ // LANE
    for d in range(1, m + 1):
        if m % d:
            continue
        tk = (m // d) * LANE
        if num_rel * np_ * tk <= budget_bytes:
            return tk
    return LANE


def _estimate_vmem_bytes(np_, fp, dp, tk, num_rel, num_layers):
    b = 0
    b += 2 * np_ * fp * 2              # x (bf16, double-buffered)
    b += 2 * fp * dp * 2               # fw
    b += 2 * 8 * dp * 4                # fb
    b += 2 * (num_rel * np_) * tk * 1  # A tile (int8, double-buffered)
    b += 2 * (num_rel * np_) * LANE * 4  # inv_deg ([.,1] pads to 128 lanes)
    b += 2 * dp * dp * 2               # w_root (per-layer block, double-buffered)
    b += 2 * num_rel * dp * dp * 2     # w_rel
    b += 2 * 8 * dp * 4                # bias
    b += 2 * np_ * dp * 2              # out (bf16)
    b += np_ * dp * 4                  # h scratch
    b += (num_rel * np_) * dp * 4      # msgs scratch
    return b


def rgcn_fused_call(x_p, f_w, f_b, a_counts, inv_deg, w_root, w_rel, b_lay,
                    num_rel, num_layers):
    np_, fp = x_p.shape
    dp = f_w.shape[1]
    tk = _pick_tk(np_, num_rel)
    nk = np_ // tk

    vmem_limit = min(max(int(_estimate_vmem_bytes(np_, fp, dp, tk, num_rel,
                                                  num_layers) * 1.3) + (4 << 20),
                         32 << 20), 100 << 20)

    return pl.pallas_call(
        _rgcn_fused_kernel,
        out_shape=jax.ShapeDtypeStruct((np_, dp), jnp.bfloat16),
        grid_spec=pltpu.PrefetchScalarGridSpec(
            num_scalar_prefetch=0,
            grid=(num_layers, nk),
            in_specs=[
                pl.BlockSpec((np_, fp), lambda l, k: (0, 0)),                # x
                pl.BlockSpec((fp, dp), lambda l, k: (0, 0)),                 # fw
                pl.BlockSpec((1, dp), lambda l, k: (0, 0)),                  # fb
                pl.BlockSpec((num_rel * np_, tk), lambda l, k: (0, k)),      # A counts
                pl.BlockSpec((num_rel * np_, 1), lambda l, k: (0, 0)),       # inv_deg
                pl.BlockSpec((1, dp, dp), lambda l, k: (l, 0, 0)),           # w_root
                pl.BlockSpec((1, num_rel, dp, dp), lambda l, k: (l, 0, 0, 0)),  # w_rel
                pl.BlockSpec((1, 1, dp), lambda l, k: (l, 0, 0)),            # bias
            ],
            out_specs=pl.BlockSpec((np_, dp), lambda l, k: (0, 0)),
            scratch_shapes=[
                pltpu.VMEM((np_, dp), jnp.float32),             # h
                pltpu.VMEM((num_rel * np_, dp), jnp.float32),   # msgs
            ]),
        # Both axes carry dependencies (layer: h update; k: msgs reduction).
        # TODO(synk): to use v7x's 2nd TensorCore, split into per-layer calls with a
        # "parallel" dst-row axis (cross-layer h residency can't be shared across cores).
        compiler_params=pltpu.CompilerParams(
            dimension_semantics=("arbitrary", "arbitrary"),
            vmem_limit_bytes=vmem_limit),
    )(x_p, f_w, f_b, a_counts, inv_deg, w_root, w_rel, b_lay)


# ------------------------------ Model wrapper ---------------------------------

def init_params(key, num_node_features, embedding_size, num_relations, n_layers=3):
    keys = jax.random.split(key, 2 + 3 * n_layers)
    params = {
        # torch Linear weight is [D, F]; stored transposed [F, D] for right-mult
        "f_w": 0.1 * jax.random.normal(keys[0], (num_node_features, embedding_size), jnp.float32),
        "f_b": 0.1 * jax.random.normal(keys[1], (1, embedding_size), jnp.float32),
        "layers": [],
    }
    for l in range(n_layers):
        k0, k1, k2 = keys[2 + 3 * l: 5 + 3 * l]
        params["layers"].append({
            "w_rel": 0.1 * jax.random.normal(k0, (num_relations, embedding_size, embedding_size), jnp.float32),
            "w_root": 0.1 * jax.random.normal(k1, (embedding_size, embedding_size), jnp.float32),
            "bias": 0.1 * jax.random.normal(k2, (1, embedding_size), jnp.float32),
        })
    return params


def pack_params(params, num_node_features, embedding_size, num_relations):
    # Zero-pad feature dims to 128 lanes; keep per-layer weights separate
    # (no K-concat: projections accumulate in-kernel).
    fp = _round_up(num_node_features, LANE)
    dp = _round_up(embedding_size, LANE)
    f_w = jnp.zeros((fp, dp), jnp.float32)
    f_w = f_w.at[:num_node_features, :embedding_size].set(params["f_w"])
    f_b = jnp.zeros((1, dp), jnp.float32).at[:, :embedding_size].set(params["f_b"])
    w_root, w_rel, b_lay = [], [], []
    for layer in params["layers"]:
        w_root.append(jnp.zeros((dp, dp), jnp.float32)
                      .at[:embedding_size, :embedding_size].set(layer["w_root"]))
        w_rel.append(jnp.zeros((num_relations, dp, dp), jnp.float32)
                     .at[:, :embedding_size, :embedding_size].set(layer["w_rel"]))
        b_lay.append(jnp.zeros((1, dp), jnp.float32).at[:, :embedding_size].set(layer["bias"]))
    w_root = jnp.stack(w_root, 0).astype(jnp.bfloat16)   # [L, Dp, Dp]
    w_rel = jnp.stack(w_rel, 0).astype(jnp.bfloat16)     # [L, R, Dp, Dp]
    b_lay = jnp.stack(b_lay, 0)                          # [L, 1, Dp] f32
    return f_w.astype(jnp.bfloat16), f_b, w_root, w_rel, b_lay, fp, dp


def build_rel_counts(edge_index, edge_type, num_nodes, num_relations):
    # counts[r, i, j] = #(j->i edges of type r);  inv_deg[r, i] = 1/deg (0 if deg==0).
    src, dst = edge_index[0], edge_index[1]
    counts = jnp.zeros((num_relations, num_nodes, num_nodes), jnp.float32)
    counts = counts.at[edge_type, dst, src].add(1.0)
    deg = counts.sum(axis=2)
    inv_deg = jnp.where(deg > 0, 1.0 / jnp.where(deg > 0, deg, 1.0), 0.0)
    return counts, inv_deg


def rgcn_forward(params, x, edge_index, edge_attr, num_relations):
    num_nodes, num_feat = x.shape
    embedding_size = params["f_w"].shape[1]
    num_layers = len(params["layers"])
    edge_type = jnp.argmax(edge_attr, axis=1)                  # data.edge_attr.argmax(dim=1)
    counts, inv_deg = build_rel_counts(edge_index, edge_type, num_nodes, num_relations)

    f_w, f_b, w_root, w_rel, b_lay, fp, dp = pack_params(
        params, num_feat, embedding_size, num_relations)

    # Pad node count to 128 so every block dim is lane/sublane aligned. Padded
    # nodes have zero adjacency rows & columns, so they never leak into real rows;
    # padded output rows are sliced off below.
    np_ = _round_up(num_nodes, LANE)
    x_p = jnp.zeros((np_, fp), jnp.float32).at[:num_nodes, :num_feat].set(x)
    a_p = jnp.zeros((num_relations, np_, np_), jnp.float32)
    a_p = a_p.at[:, :num_nodes, :num_nodes].set(counts)
    # int8 edge counts (exact for multiplicity <= 127); 1/deg applied in f32 in-kernel.
    a_counts = a_p.reshape(num_relations * np_, np_).astype(jnp.int8)
    inv_p = jnp.zeros((num_relations, np_), jnp.float32)
    inv_p = inv_p.at[:, :num_nodes].set(inv_deg)
    inv_p = inv_p.reshape(num_relations * np_, 1)

    out_p = rgcn_fused_call(x_p.astype(jnp.bfloat16), f_w, f_b, a_counts, inv_p,
                            w_root, w_rel, b_lay, num_relations, num_layers)
    return out_p[:num_nodes, :embedding_size].astype(jnp.float32)


# TODO(synk): for large/sparse graphs replace the dense [R,N,N] adjacency (built in
# plain JAX, O(R*N^2) HBM) with CSR + PrefetchScalarGridSpec (scalar-prefetch row
# pointers / neighbor ids, row-tile grid, DMA-gather of h rows) so the aggregation
# is O(E*D) instead of O(R*N^2*D).


def rgcn_reference(params, x, edge_index, edge_attr, num_relations):
    # Pure-JAX f32 reference (same parameter convention) for correctness check.
    num_nodes = x.shape[0]
    edge_type = jnp.argmax(edge_attr, axis=1)
    counts, inv_deg = build_rel_counts(edge_index, edge_type, num_nodes, num_relations)
    a = counts * inv_deg[:, :, None]
    h = jnp.maximum(x @ params["f_w"] + params["f_b"], 0.0)
    for layer in params["layers"]:
        acc = h @ layer["w_root"] + layer["bias"]
        for r in range(num_relations):
            acc = acc + (a[r] @ h) @ layer["w_rel"][r]
        h = jnp.maximum(acc, 0.0)
    return h


# ----------------------------------- Main --------------------------------------

if __name__ == "__main__":
    num_nodes = 16
    num_node_features = 16
    embedding_size = 32
    num_relations = 2
    num_edges = 40

    key = jax.random.PRNGKey(0)
    k_x, k_src, k_dst, k_rel, k_params = jax.random.split(key, 5)

    x = jax.random.normal(k_x, (num_nodes, num_node_features), jnp.float32)
    src = jax.random.randint(k_src, (num_edges,), 0, num_nodes)
    dst = jax.random.randint(k_dst, (num_edges,), 0, num_nodes)
    edge_index = jnp.stack([src, dst], axis=0)                 # [2, E]
    rel = jax.random.randint(k_rel, (num_edges,), 0, num_relations)
    edge_attr = jax.nn.one_hot(rel, num_relations, dtype=jnp.float32)  # [E, R]

    params = init_params(k_params, num_node_features, embedding_size, num_relations)

    out = rgcn_forward(params, x, edge_index, edge_attr, num_relations)
    out = jax.block_until_ready(out)
    ref = rgcn_reference(params, x, edge_index, edge_attr, num_relations)

    assert out.shape == (num_nodes, embedding_size)
    assert jnp.all(jnp.isfinite(out))
    # bf16 MXU inputs / bf16 output store -> allow small drift vs the f32 reference
    assert jnp.allclose(out, ref, atol=5e-2, rtol=5e-2), float(jnp.max(jnp.abs(out - ref)))
    print("KERNEL_OK")
</pallas_src>

<mosaic_0001>
module attributes {stable_mosaic.version = 11 : i64} {
  func.func @_rgcn_fused_kernel(%arg0: i32, %arg1: i32, %arg2: memref<128x128xbf16, #tpu.memory_space<vmem>>, %arg3: memref<128x128xbf16, #tpu.memory_space<vmem>>, %arg4: memref<1x128xf32, #tpu.memory_space<vmem>>, %arg5: memref<256x128xi8, #tpu.memory_space<vmem>>, %arg6: memref<256x1xf32, #tpu.memory_space<vmem>>, %arg7: memref<1x128x128xbf16, #tpu.memory_space<vmem>>, %arg8: memref<1x2x128x128xbf16, #tpu.memory_space<vmem>>, %arg9: memref<1x1x128xf32, #tpu.memory_space<vmem>>, %arg10: memref<128x128xbf16, #tpu.memory_space<vmem>>, %arg11: memref<128x128xf32, #tpu.memory_space<vmem>>, %arg12: memref<256x128xf32, #tpu.memory_space<vmem>>) attributes {dimension_semantics = [#tpu.dimension_semantics<arbitrary>, #tpu.dimension_semantics<arbitrary>], iteration_bounds = array<i64: 3, 1>, scalar_prefetch = 0 : i64, scratch_operands = 2 : i64, tpu.core_type = #tpu.core_type<tc>, window_params = [{pipeline_mode = #tpu.pipeline_mode<synchronous>, transform_indices = @transform_0, window_bounds = array<i64: 128, 128>}, {pipeline_mode = #tpu.pipeline_mode<synchronous>, transform_indices = @transform_1, window_bounds = array<i64: 128, 128>}, {pipeline_mode = #tpu.pipeline_mode<synchronous>, transform_indices = @transform_2, window_bounds = array<i64: 1, 128>}, {transform_indices = @transform_3, window_bounds = array<i64: 256, 128>}, {pipeline_mode = #tpu.pipeline_mode<synchronous>, transform_indices = @transform_4, window_bounds = array<i64: 256, 1>}, {transform_indices = @transform_5, window_bounds = array<i64: 1, 128, 128>}, {transform_indices = @transform_6, window_bounds = array<i64: 1, 2, 128, 128>}, {transform_indices = @transform_7, window_bounds = array<i64: 1, 1, 128>}, {pipeline_mode = #tpu.pipeline_mode<synchronous>, transform_indices = @transform_8, window_bounds = array<i64: 128, 128>}]} {
    %c0_i32 = arith.constant 0 : i32
    %0 = arith.cmpi eq, %arg0, %c0_i32 : i32
    %c0_i32_0 = arith.constant 0 : i32
    %1 = arith.cmpi eq, %arg1, %c0_i32_0 : i32
    %2 = arith.andi %0, %1 : i1
    %3 = arith.extui %2 : i1 to i32
    %c0_i32_1 = arith.constant 0 : i32
    %4 = arith.cmpi ne, %3, %c0_i32_1 : i32
    scf.if %4 {
      %c0_12 = arith.constant 0 : index
      %c0_13 = arith.constant 0 : index
      %23 = vector.load %arg2[%c0_12, %c0_13] : memref<128x128xbf16, #tpu.memory_space<vmem>>, vector<128x128xbf16>
      %c0_14 = arith.constant 0 : index
      %c0_15 = arith.constant 0 : index
      %24 = vector.load %arg3[%c0_14, %c0_15] : memref<128x128xbf16, #tpu.memory_space<vmem>>, vector<128x128xbf16>
      %cst_16 = arith.constant dense<0.000000e+00> : vector<128x128xf32>
      %25 = tpu.matmul %23, %24, %cst_16 {dimension_numbers = #tpu.dot_dimension_numbers<[1], [0], [0], [1], [0, 0, 1, 1], [], []>} : vector<128x128xbf16>, vector<128x128xbf16>, vector<128x128xf32> -> vector<128x128xf32>
      %c0_17 = arith.constant 0 : index
      %c0_18 = arith.constant 0 : index
      %26 = vector.load %arg4[%c0_17, %c0_18] : memref<1x128xf32, #tpu.memory_space<vmem>>, vector<1x128xf32>
      %27 = vector.broadcast %26 : vector<1x128xf32> to vector<128x128xf32>
      %28 = arith.addf %25, %27 : vector<128x128xf32>
      %cst_19 = arith.constant 0.000000e+00 : f32
      %29 = vector.broadcast %cst_19 : f32 to vector<128x128xf32>
      %30 = arith.maximumf %28, %29 : vector<128x128xf32>
      %c0_20 = arith.constant 0 : index
      %c0_21 = arith.constant 0 : index
      %31 = vector.load %arg11[%c0_20, %c0_21] : memref<128x128xf32, #tpu.memory_space<vmem>>, vector<128x128xf32>
      tpu.vector_store %arg11[%c0_20, %c0_21], %30 {strides = array<i32>} : memref<128x128xf32, #tpu.memory_space<vmem>>, vector<128x128xf32>,
    } else {
    }
    %c0_i32_2 = arith.constant 0 : i32
    %5 = arith.cmpi eq, %arg1, %c0_i32_2 : i32
    %6 = arith.extui %5 : i1 to i32
    %c0_i32_3 = arith.constant 0 : i32
    %7 = arith.cmpi ne, %6, %c0_i32_3 : i32
    scf.if %7 {
      %cst_12 = arith.constant 0.000000e+00 : f32
      %23 = vector.broadcast %cst_12 : f32 to vector<256x128xf32>
      %c0_13 = arith.constant 0 : index
      %c0_14 = arith.constant 0 : index
      %24 = vector.load %arg12[%c0_13, %c0_14] : memref<256x128xf32, #tpu.memory_space<vmem>>, vector<256x128xf32>
      tpu.vector_store %arg12[%c0_13, %c0_14], %23 {strides = array<i32>} : memref<256x128xf32, #tpu.memory_space<vmem>>, vector<256x128xf32>,
    } else {
    }
    %c128_i32 = arith.constant 128 : i32
    %8 = arith.muli %arg1, %c128_i32 : i32
    %9 = tpu.assume_multiple %8, 128 : i32
    %10 = arith.index_cast %9 : i32 to index
    %c0 = arith.constant 0 : index
    %11 = vector.load %arg11[%10, %c0] : memref<128x128xf32, #tpu.memory_space<vmem>>, vector<128x128xf32>
    %12 = arith.truncf %11 : vector<128x128xf32> to vector<128x128xbf16>
    %c0_4 = arith.constant 0 : index
    %c0_5 = arith.constant 0 : index
    %13 = vector.load %arg5[%c0_4, %c0_5] : memref<256x128xi8, #tpu.memory_space<vmem>>, vector<256x128xi8>
    %14 = arith.sitofp %13 : vector<256x128xi8> to vector<256x128xf32>
    %15 = arith.truncf %14 : vector<256x128xf32> to vector<256x128xbf16>
    %c0_6 = arith.constant 0 : index
    %c0_7 = arith.constant 0 : index
    %16 = vector.load %arg12[%c0_6, %c0_7] : memref<256x128xf32, #tpu.memory_space<vmem>>, vector<256x128xf32>
    %cst = arith.constant dense<0.000000e+00> : vector<256x128xf32>
    %17 = tpu.matmul %15, %12, %cst {dimension_numbers = #tpu.dot_dimension_numbers<[1], [0], [0], [1], [0, 0, 1, 1], [], []>} : vector<256x128xbf16>, vector<128x128xbf16>, vector<256x128xf32> -> vector<256x128xf32>
    %18 = arith.addf %16, %17 : vector<256x128xf32>
    %c0_8 = arith.constant 0 : index
    %c0_9 = arith.constant 0 : index
    %19 = vector.load %arg12[%c0_8, %c0_9] : memref<256x128xf32, #tpu.memory_space<vmem>>, vector<256x128xf32>
    tpu.vector_store %arg12[%c0_8, %c0_9], %18 {strides = array<i32>} : memref<256x128xf32, #tpu.memory_space<vmem>>, vector<256x128xf32>,
    %c0_i32_10 = arith.constant 0 : i32
    %20 = arith.cmpi eq, %arg1, %c0_i32_10 : i32
    %21 = arith.extui %20 : i1 to i32
    %c0_i32_11 = arith.constant 0 : i32
    %22 = arith.cmpi ne, %21, %c0_i32_11 : i32
    scf.if %22 {
      %c0_12 = arith.constant 0 : index
      %c0_13 = arith.constant 0 : index
      %23 = vector.load %arg11[%c0_12, %c0_13] : memref<128x128xf32, #tpu.memory_space<vmem>>, vector<128x128xf32>
      %24 = arith.truncf %23 : vector<128x128xf32> to vector<128x128xbf16>
      %c0_14 = arith.constant 0 : index
      %c0_15 = arith.constant 0 : index
      %c0_16 = arith.constant 0 : index
      %25 = vector.load %arg7[%c0_14, %c0_15, %c0_16] : memref<1x128x128xbf16, #tpu.memory_space<vmem>>, vector<1x128x128xbf16>
      %26 = vector.shape_cast %25 : vector<1x128x128xbf16> to vector<128x128xbf16>
      %cst_17 = arith.constant dense<0.000000e+00> : vector<128x128xf32>
      %27 = tpu.matmul %24, %26, %cst_17 {dimension_numbers = #tpu.dot_dimension_numbers<[1], [0], [0], [1], [0, 0, 1, 1], [], []>} : vector<128x128xbf16>, vector<128x128xbf16>, vector<128x128xf32> -> vector<128x128xf32>
      %c0_18 = arith.constant 0 : index
      %c0_19 = arith.constant 0 : index
      %c0_20 = arith.constant 0 : index
      %28 = vector.load %arg9[%c0_18, %c0_19, %c0_20] : memref<1x1x128xf32, #tpu.memory_space<vmem>>, vector<1x1x128xf32>
      %29 = vector.shape_cast %28 : vector<1x1x128xf32> to vector<1x128xf32>
      %30 = vector.broadcast %29 : vector<1x128xf32> to vector<128x128xf32>
      %31 = arith.addf %27, %30 : vector<128x128xf32>
      %c0_21 = arith.constant 0 : index
      %c0_22 = arith.constant 0 : index
      %32 = vector.load %arg12[%c0_21, %c0_22] : memref<256x128xf32, #tpu.memory_space<vmem>>, vector<128x128xf32>
      %c0_23 = arith.constant 0 : index
      %c0_24 = arith.constant 0 : index
      %33 = vector.load %arg6[%c0_23, %c0_24] : memref<256x1xf32, #tpu.memory_space<vmem>>, vector<128x1xf32>
      %34 = vector.broadcast %33 : vector<128x1xf32> to vector<128x128xf32>
      %35 = arith.mulf %32, %34 : vector<128x128xf32>
      %36 = arith.truncf %35 : vector<128x128xf32> to vector<128x128xbf16>
      %c0_25 = arith.constant 0 : index
      %c0_26 = arith.constant 0 : index
      %c0_27 = arith.constant 0 : index
      %c0_28 = arith.constant 0 : index
      %37 = vector.load %arg8[%c0_25, %c0_26, %c0_27, %c0_28] : memref<1x2x128x128xbf16, #tpu.memory_space<vmem>>, vector<1x1x128x128xbf16>
      %38 = vector.shape_cast %37 : vector<1x1x128x128xbf16> to vector<128x128xbf16>
      %cst_29 = arith.constant dense<0.000000e+00> : vector<128x128xf32>
      %39 = tpu.matmul %36, %38, %cst_29 {dimension_numbers = #tpu.dot_dimension_numbers<[1], [0], [0], [1], [0, 0, 1, 1], [], []>} : vector<128x128xbf16>, vector<128x128xbf16>, vector<128x128xf32> -> vector<128x128xf32>
      %40 = arith.addf %31, %39 : vector<128x128xf32>
      %c128 = arith.constant 128 : index
      %c0_30 = arith.constant 0 : index
      %41 = vector.load %arg12[%c128, %c0_30] : memref<256x128xf32, #tpu.memory_space<vmem>>, vector<128x128xf32>
      %c128_31 = arith.constant 128 : index
      %c0_32 = arith.constant 0 : index
      %42 = vector.load %arg6[%c128_31, %c0_32] : memref<256x1xf32, #tpu.memory_space<vmem>>, vector<128x1xf32>
      %43 = vector.broadcast %42 : vector<128x1xf32> to vector<128x128xf32>
      %44 = arith.mulf %41, %43 : vector<128x128xf32>
      %45 = arith.truncf %44 : vector<128x128xf32> to vector<128x128xbf16>
      %c0_33 = arith.constant 0 : index
      %c1 = arith.constant 1 : index
      %c0_34 = arith.constant 0 : index
      %c0_35 = arith.constant 0 : index
      %46 = vector.load %arg8[%c0_33, %c1, %c0_34, %c0_35] : memref<1x2x128x128xbf16, #tpu.memory_space<vmem>>, vector<1x1x128x128xbf16>
      %47 = vector.shape_cast %46 : vector<1x1x128x128xbf16> to vector<128x128xbf16>
      %cst_36 = arith.constant dense<0.000000e+00> : vector<128x128xf32>
      %48 = tpu.matmul %45, %47, %cst_36 {dimension_numbers = #tpu.dot_dimension_numbers<[1], [0], [0], [1], [0, 0, 1, 1], [], []>} : vector<128x128xbf16>, vector<128x128xbf16>, vector<128x128xf32> -> vector<128x128xf32>
      %49 = arith.addf %40, %48 : vector<128x128xf32>
      %cst_37 = arith.constant 0.000000e+00 : f32
      %50 = vector.broadcast %cst_37 : f32 to vector<128x128xf32>
      %51 = arith.maximumf %49, %50 : vector<128x128xf32>
      %c0_38 = arith.constant 0 : index
      %c0_39 = arith.constant 0 : index
      %52 = vector.load %arg11[%c0_38, %c0_39] : memref<128x128xf32, #tpu.memory_space<vmem>>, vector<128x128xf32>
      tpu.vector_store %arg11[%c0_38, %c0_39], %51 {strides = array<i32>} : memref<128x128xf32, #tpu.memory_space<vmem>>, vector<128x128xf32>,
      %53 = arith.truncf %51 : vector<128x128xf32> to vector<128x128xbf16>
      %c0_40 = arith.constant 0 : index
      %c0_41 = arith.constant 0 : index
      %54 = vector.load %arg10[%c0_40, %c0_41] : memref<128x128xbf16, #tpu.memory_space<vmem>>, vector<128x128xbf16>
      tpu.vector_store %arg10[%c0_40, %c0_41], %53 {strides = array<i32>} : memref<128x128xbf16, #tpu.memory_space<vmem>>, vector<128x128xbf16>,
    } else {
    }
    return
  }
  func.func @transform_0(%arg0: i32, %arg1: i32) -> (i32, i32) {
    %c0_i32 = arith.constant 0 : i32
    %c0_i32_0 = arith.constant 0 : i32
    %c0_i32_1 = arith.constant 0 : i32
    return %c0_i32, %c0_i32_0 : i32, i32
  }
  func.func @transform_1(%arg0: i32, %arg1: i32) -> (i32, i32) {
    %c0_i32 = arith.constant 0 : i32
    %c0_i32_0 = arith.constant 0 : i32
    %c0_i32_1 = arith.constant 0 : i32
    return %c0_i32, %c0_i32_0 : i32, i32
  }
  func.func @transform_2(%arg0: i32, %arg1: i32) -> (i32, i32) {
    %c0_i32 = arith.constant 0 : i32
    %c0_i32_0 = arith.constant 0 : i32
    %c0_i32_1 = arith.constant 0 : i32
    return %c0_i32, %c0_i32_0 : i32, i32
  }
  func.func @transform_3(%arg0: i32, %arg1: i32) -> (i32, i32) {
    %c0_i32 = arith.constant 0 : i32
    %c0_i32_0 = arith.constant 0 : i32
    return %c0_i32, %arg1 : i32, i32
  }
  func.func @transform_4(%arg0: i32, %arg1: i32) -> (i32, i32) {
    %c0_i32 = arith.constant 0 : i32
    %c0_i32_0 = arith.constant 0 : i32
    %c0_i32_1 = arith.constant 0 : i32
    return %c0_i32, %c0_i32_0 : i32, i32
  }
  func.func @transform_5(%arg0: i32, %arg1: i32) -> (i32, i32, i32) {
    %c0_i32 = arith.constant 0 : i32
    %c0_i32_0 = arith.constant 0 : i32
    %c0_i32_1 = arith.constant 0 : i32
    return %arg0, %c0_i32, %c0_i32_0 : i32, i32, i32
  }
  func.func @transform_6(%arg0: i32, %arg1: i32) -> (i32, i32, i32, i32) {
    %c0_i32 = arith.constant 0 : i32
    %c0_i32_0 = arith.constant 0 : i32
    %c0_i32_1 = arith.constant 0 : i32
    %c0_i32_2 = arith.constant 0 : i32
    return %arg0, %c0_i32, %c0_i32_0, %c0_i32_1 : i32, i32, i32, i32
  }
  func.func @transform_7(%arg0: i32, %arg1: i32) -> (i32, i32, i32) {
    %c0_i32 = arith.constant 0 : i32
    %c0_i32_0 = arith.constant 0 : i32
    %c0_i32_1 = arith.constant 0 : i32
    return %arg0, %c0_i32, %c0_i32_0 : i32, i32, i32
  }
  func.func @transform_8(%arg0: i32, %arg1: i32) -> (i32, i32) {
    %c0_i32 = arith.constant 0 : i32
    %c0_i32_0 = arith.constant 0 : i32
    %c0_i32_1 = arith.constant 0 : i32
    return %c0_i32, %c0_i32_0 : i32, i32
  }
}

</mosaic_0001>

<bundles_post_ra>
// kernel: tpu_custom_call.1
= control target key start
LH: loop header
LB: loop body
LE: loop exit
PB: predicated region body
PF: predicated region fallthrough
CT: control target
= control target key end

     0   :  { %s3350_s0 = inlined_call_operand.vmem [shape: bf16[128,128], index: 0, kind: input, shape index: {}]   ;;  %s3351_s1 = inlined_call_operand.hbm [shape: bf16[128,128], index: 1, kind: input, shape index: {}]   ;;  %s3352_s2 = inlined_call_operand.vmem [shape: f32[1,128], index: 2, kind: input, shape index: {}]   ;;  %s3353_s3 = inlined_call_operand.hbm [shape: s8[256,128], index: 3, kind: input, shape index: {}]   ;;  %s3354_s4 = inlined_call_operand.vmem [shape: f32[256,1], index: 4, kind: input, shape index: {}]   ;;  %s3355_s5 = inlined_call_operand.vmem [shape: bf16[3,128,128], index: 5, kind: input, shape index: {}]   ;;  %s3356_s6 = inlined_call_operand.hbm [shape: bf16[3,2,128,128], index: 6, kind: input, shape index: {}]   ;;  %s3357_s7 = inlined_call_operand.vmem [shape: f32[3,1,128], index: 7, kind: input, shape index: {}]   ;;  %s3358_s8 = inlined_call_operand.hbm [shape: bf16[128,128], index: 8, kind: output, shape index: {}]  }
   0x1   :  { %3363 = sst [smem:[#allocation15_spill]] %s3351_s1 }
   0x2   :  { %3364 = sst [smem:[#allocation16_spill]] %s3352_s2 }
   0x3   :  { %3365 = sst [smem:[#allocation17_spill]] %s3354_s4 }
   0x4   :  { %3366 = sst [smem:[#allocation18_spill]] %s3358_s8 }
   0x5   :  { %13 = vsyncpa [#allocation5], 0 }
   0x6   :  { %14 = vsyncpa [#allocation8], 0 }
   0x7   :  { %15 = vsyncpa [#allocation6], 0  ;;  %s2862_s27 = smov 0   ;;  %s2864_s28 = smov 0  }
   0x8   :  { %s2866_s29 = smov 0   ;;  %s2868_s30 = smov 0  }
   0x9   :  { %s2870_s9 = smov 0   ;;  %s2872_s10 = smov 0  }
   0xa LB: > { %s2891_s11 = sadd.s32 4294967295, %s2804_s10   ;;  %p183_p0 = scmp.ne.s32.totalorder %s2792_s29, %s2788_s28  ;;  %s2804_s10 = sphi %s2872_s10, %s21_s10   ;;  %s2800_s9 = sphi %s2870_s9, %s3386_s9   ;;  %s2796_s30 = sphi %s2868_s30, %s3385_s30   ;;  %s2792_s29 = sphi %s2866_s29, %s3384_s29   ;;  %s2788_s28 = sphi %s2864_s28, %s3383_s28   ;;  %s2784_s27 = sphi %s2862_s27, %s3382_s27  }
   0xb   : > { %p184_p1 = scmp.eq.s32.totalorder %s2804_s10, 0  ;;  %p189_p2 = scmp.ne.s32.totalorder %s2788_s28, %s2784_s27 }
   0xc   : > { %p3359_p3 = scmp.eq.s32.totalorder %s2891_s11, 0  ;;  %p2052_p4 = scmp.ge.s32.totalorder %s2804_s10, 1 }
   0xd   : > { %p185_p5 = por %p184_p1, %p183_p0  ;;  %p247_p6 = scmp.lt.s32.totalorder %s2804_s10, 4 }
   0xe   : > { %p2902_p7 = por %p3359_p3, %p189_p2  ;;  %s2806_s14 = smov [#allocation4]  }
   0xf   : > { %p2906_p8 = pnand %p2052_p4, %p247_p6  ;;  %s262_s15 = sshll.u32 %s2806_s14, 4  ;;  %s263_s15 = int_to_ptr.vmem [resolvable:$true] %s262_s15 }
  0x10   : > { %p2533_p11 = scmp.lt.s32.totalorder %s2804_s10, 3  ;;  %s2649_s18 = scalar_lea.vmem %s263_s15, 1024 }
  0x11   : > { %p2520_p9 = pneg %p2906_p8  ;;  %p2650_p0 = scmp.ne.s32.totalorder %s263_s15, %s2649_s18 }
  0x12   : > { %p2919_p12 = pnand %p2533_p11, %p185_p5  ;;  %p2657_p4 = scmp.lt.s32.totalorder %s263_s15, %s263_s15 }
  0x13   : > { %p2914_p10 = pnand %p2520_p9, %p3359_p3  ;;  %p2658_p6 = scmp.lt.s32.totalorder %s2649_s18, %s2649_s18 }
  0x15   : > { %p2640_p13 = pneg %p2914_p10  ;;  %p2659_p9 = por %p2658_p6, %p2657_p4 }
  0x17   : > { %p2652_p1 = pnand %p2650_p0, %p2640_p13 }
  0x19   : > { %p2653_p2 = pneg %p2652_p1 }
  0x1b   : > { %p2660_p3 = pnand %p2659_p9, %p2653_p2 }
  0x1d   : > { %2663 = shalt.err (!%p2660_p3)
}
  0x1e   : > { %s3360_s19 = smov 64   ;;  %s3361_s20 = smov 4  }
  0x1f   : > { %s3371_s1 = sld [smem:[#allocation15_spill]]  ;;  %s2809_s23 = smov [#allocation7]  }
  0x20   : > { %s280_s24 = sshll.u32 %s2809_s23, 4  ;;  %s281_s24 = int_to_ptr.vmem [resolvable:$true] %s280_s24 }
  0x21   : > { %s2675_s25 = scalar_lea.vmem %s281_s24, 1024  ;;  %p2683_p0 = scmp.lt.s32.totalorder %s281_s24, %s281_s24 }
  0x22   : > { %p2676_p5 = scmp.ne.s32.totalorder %s281_s24, %s2675_s25  ;;  %p2684_p1 = scmp.lt.s32.totalorder %s2675_s25, %s2675_s25 }
  0x24   : > { %p2678_p3 = pnand %p2676_p5, %p2640_p13  ;;  %p2685_p2 = por %p2684_p1, %p2683_p0 }
  0x25   : > { %2523 = dma.hbm_to_vmem [thread:$0]  (!%p2914_p10), %s3371_s1, 1024, %s263_s15, [#allocation5], %s3360_s19, %s3360_s19, %s3361_s20  }
  0x26   : > { %p2679_p11 = pneg %p2678_p3 }
  0x28   : > { %p2686_p4 = pnand %p2685_p2, %p2679_p11 }
  0x2a   : > { %2689 = shalt.err (!%p2686_p4)
}
  0x2b   : > { %s2810_s26 = smov 128   ;;  %s2811_s27 = smov 8  }
  0x2c   : > { %2526 = dma.hbm_to_vmem [thread:$0]  (!%p2914_p10), %s3353_s3, 1024, %s281_s24, [#allocation8], %s2810_s26, %s2810_s26, %s2811_s27  }
  0x2d   : > { %s176_s18 = sadd.s32 1, %s2792_s29  ;;  %s305_s21 = sand.u32 1, %s2804_s10  }
  0x2e   : > { %s33_s22 = sadd.s32 1, %s2800_s9  ;;  %s307_s23 = sand.u32 1, %s2792_s29  }
  0x2f   : > { %p35_p13 = scmp.ge.s32.totalorder %s33_s22, 3  ;;  %s2056_s25 = sshll.u32 %s307_s23, 7 }
  0x30   : > { %s2144_s19 = sshll.u32 %s2800_s9, 11  ;;  %s309_s4 = scalar_lea.vmem [#allocation9], %s2056_s25 }
  0x31   : > { %s3388_s22 = smov (%p35_p13, %s33_s22), 0  ;;  %s315_s8 = scalar_lea.hbm %s3356_s6, %s2144_s19 }
  0x32   : > { %s173_s16 = ssub.s32 %s2800_s9, %s3388_s22  ;;  %s316_s2 = sshll.u32 %s309_s4, 4  ;;  %s317_s2 = int_to_ptr.vmem [resolvable:$true] %s316_s2 }
  0x33   : > { %p2956_p6 = scmp.eq.s32.totalorder %s173_s16, 0  ;;  %s306_s26 = scalar_lea.sflag [#allocation5], %s305_s21 }
  0x34   : > { %p2692_p10 = pneg %p2919_p12  ;;  %s2703_s27 = scalar_lea.vmem %s317_s2, 2048 }
  0x35   : > { %p2704_p9 = scmp.ne.s32.totalorder %s317_s2, %s2703_s27  ;;  %s2812_s14 = smov [#allocation9]  }
  0x36   : > { %s2708_s15 = sshll.u32 %s2812_s14, 4  ;;  %s2709_s15 = int_to_ptr.vmem [resolvable:$false] %s2708_s15 }
  0x37   : > { %p2706_p5 = pnand %p2704_p9, %p2692_p10  ;;  %s2710_s1 = scalar_lea.vmem %s2709_s15, 4096 }
  0x38   : > { %p2711_p11 = scmp.lt.s32.totalorder %s317_s2, %s2709_s15  ;;  %p2712_p0 = scmp.lt.s32.totalorder %s2710_s1, %s2703_s27 }
  0x39   : > { %p2707_p3 = pneg %p2706_p5 }
  0x3a   : > { %p2713_p1 = por %p2712_p0, %p2711_p11 }
  0x3c   : > { %p2714_p2 = pnand %p2713_p1, %p2707_p3 }
  0x3e   : > { %2717 = shalt.err (!%p2714_p2)
}
  0x3f   : > { %s3373_s4 = smov 4   ;;  %s3374_s19 = smov 64  }
  0x40   : > { %2530 = dma.hbm_to_vmem [thread:$0]  (!%p2919_p12), %s315_s8, 2048, %s317_s2, %s306_s26, %s3374_s19, %s3374_s19, %s3373_s4  }
  0x41   : > { %s2972_s20 = scalar_select %p2956_p6, %s2792_s29, %s176_s18  }
  0x42   : > { %334 = sbr.rel (%p2906_p8) target bundleno = 841 (0x349), region = 52  ;;  %p3375_p4 = scmp.eq.s32.totalorder (!%p2906_p8), %s2891_s11, 0 }
  0x47   : > { %2767 = dma.done.wait (%p3375_p4), [#allocation5], 1024   ;;  %p3376_p13 = pmov %p3375_p4 }
  0x48   : > { %p3377_p10 = pmov %p3375_p4 }
  0x49   : > { %2769 = vsyncadd (%p3376_p13), [#allocation5], 4294966272 }
  0x4a   : > { %2771 = dma.done.wait (%p3377_p10), [#allocation8], 1024   ;;  %p3378_p9 = pmov %p3375_p4 }
  0x4b   : > { %s344_s2 = sand.u32 1, %s2891_s11   ;;  %s346_s8 = sand.u32 1, %s2788_s28  }
  0x4c   : > { %2773 = vsyncadd (%p3378_p9), [#allocation8], 4294966272  ;;  %s2062_s17 = sshll.u32 %s346_s8, 7  ;;  %s345_s13 = scalar_lea.sflag [#allocation5], %s344_s2 }
  0x4d   : > { %s2986_s18 = scalar_lea.vmem [#allocation9], %s2062_s17 }
  0x4e   : > { %2775 = dma.done.wait (%p2902_p7), %s345_s13, 2048  }
  0x4f   : > { %2777 = vsyncadd (%p2902_p7), %s345_s13, 4294965248  ;;  %p384_p8 = scmp.lt.s32.totalorder %s2796_s30, 2  ;;  %p393_p12 = scmp.eq.s32.totalorder %s2796_s30, 0 }
  0x50   : > { %v2596_v0 = vld [vmem:[#allocation4 + $0x38] sm:$0xff] (%p393_p12)   ;;  %v2597_v1 = vld [vmem:[#allocation4 + $0x30] sm:$0xff] (%p393_p12)   ;;  %v2598_v2 = vld [vmem:[#allocation4 + $0x28] sm:$0xff] (%p393_p12)   ;;  %s3379_s1 = sld [smem:[#allocation16_spill]] (%p393_p12) }
  0x51   : > { %s3390_s30 = smov (!%p384_p8, %s2796_s30), 2  ;;  %398 = sbr.rel (!%p393_p12) target bundleno = 325 (0x145), region = 68  ;;  %2298 = vmatprep.subr.bf16.mxu0 (%p393_p12), %v2596_v0  ;;  %2474 = vmatprep.subr.bf16.mxu1 (%p393_p12), %v2596_v0  ;;  %v2599_v3 = vld [vmem:[#allocation4 + $0x20] sm:$0xff] (%p393_p12)   ;;  %v2600_v6 = vld [vmem:[#allocation4 + $0x18] sm:$0xff] (%p393_p12)   ;;  %v2601_v7 = vld [vmem:[#allocation4 + $0x10] sm:$0xff] (%p393_p12)  }
  0x52   : > { %s2145_s21 = sshll.u32 %s3390_s30, 6  ;;  %s391_s16 = scalar_lea.vmem %s3357_s7, %s3390_s30  ;;  %2299 = vmatpush3.bf16.msra.mxu0 (%p393_p12), %v2596_v0  ;;  %2482 = vmatpush3.bf16.msra.mxu1 (%p393_p12), %v2596_v0  ;;  %v2604_v4 = vld [vmem:[%s3350_s0] sm:$0xff] (%p393_p12)   ;;  %v2602_v8 = vld [vmem:[#allocation4 + $0x8] sm:$0xff] (%p393_p12)   ;;  %v2608_v12 = vld [vmem:[%s3350_s0 + $0x10] sm:$0xff] (%p393_p12)  }
  0x53   : > { %s3005_s27 = scalar_lea.vmem %s3355_s5, %s2145_s21  ;;  %2300 = vmatprep.subr.bf16.mxu0 (%p393_p12), %v2597_v1  ;;  %2475 = vmatprep.subr.bf16.mxu1 (%p393_p12), %v2597_v1  ;;  %v2605_v5 = vld [vmem:[%s3350_s0 + $0x20] sm:$0xff] (%p393_p12)   ;;  %v2606_v10 = vld [vmem:[%s3350_s0 + $0x8] sm:$0xff] (%p393_p12)   ;;  %v2609_v13 = vld [vmem:[%s3350_s0 + $0x30] sm:$0xff] (%p393_p12)  }
  0x54   : > { %2314 = vmatprep.mubr.bf16.mxu0 (%p393_p12), %v2604_v4  ;;  %2322 = vmatprep.mubr.bf16.mxu1 (%p393_p12), %v2605_v5  ;;  %v2603_v9 = vld [vmem:[#allocation4] sm:$0xff] (%p393_p12)   ;;  %v2607_v11 = vld [vmem:[%s3350_s0 + $0x28] sm:$0xff] (%p393_p12)   ;;  %v2610_v14 = vld [vmem:[%s3350_s0 + $0x18] sm:$0xff] (%p393_p12)  }
  0x55   : > { %v2611_v15 = vld [vmem:[%s3350_s0 + $0x38] sm:$0xff] (%p393_p12)  }
  0x56   : > { %2301 = vmatpush3.bf16.msra.mxu0 %v2597_v1  ;;  %2483 = vmatpush3.bf16.msra.mxu1 %v2597_v1  ;;  %v2066_v16 = vld [vmem:[%s3379_s1] ss:$0 sm:$0xff] }
  0x57   : > { %2302 = vmatprep.subr.bf16.mxu0 %v2598_v2  ;;  %2476 = vmatprep.subr.bf16.mxu1 %v2598_v2 }
  0x5a   : > { %2303 = vmatpush3.bf16.msra.mxu0 %v2598_v2  ;;  %2484 = vmatpush3.bf16.msra.mxu1 %v2598_v2 }
  0x5b   : > { %2304 = vmatprep.subr.bf16.mxu0 %v2599_v3  ;;  %2477 = vmatprep.subr.bf16.mxu1 %v2599_v3 }
  0x5e   : > { %2305 = vmatpush3.bf16.msra.mxu0 %v2599_v3  ;;  %2485 = vmatpush3.bf16.msra.mxu1 %v2599_v3 }
  0x5f   : > { %2306 = vmatprep.subr.bf16.mxu0 %v2600_v6  ;;  %2478 = vmatprep.subr.bf16.mxu1 %v2600_v6 }
  0x62   : > { %2307 = vmatpush3.bf16.msra.mxu0 %v2600_v6  ;;  %2486 = vmatpush3.bf16.msra.mxu1 %v2600_v6 }
  0x63   : > { %2308 = vmatprep.subr.bf16.mxu0 %v2601_v7  ;;  %2479 = vmatprep.subr.bf16.mxu1 %v2601_v7 }
  0x66   : > { %2309 = vmatpush3.bf16.msra.mxu0 %v2601_v7  ;;  %2487 = vmatpush3.bf16.msra.mxu1 %v2601_v7 }
  0x67   : > { %2310 = vmatprep.subr.bf16.mxu0 %v2602_v8  ;;  %2480 = vmatprep.subr.bf16.mxu1 %v2602_v8 }
  0x6a   : > { %2311 = vmatpush3.bf16.msra.mxu0 %v2602_v8  ;;  %2488 = vmatpush3.bf16.msra.mxu1 %v2602_v8 }
  0x6b   : > { %2312 = vmatprep.subr.bf16.mxu0 %v2603_v9  ;;  %2481 = vmatprep.subr.bf16.mxu1 %v2603_v9 }
  0x6e   : > { %2313 = vmatpush3.bf16.msra.mxu0 %v2603_v9  ;;  %2489 = vmatpush3.bf16.msra.mxu1 %v2603_v9 }
  0x71   : > { %2315 = vmatmul.mubr.bf16.vlgmr.msra.gmra.mxu0 %v2606_v10  ;;  %2323 = vmatmul.mubr.bf16.vlgmr.msra.gmra.mxu1 %v2607_v11 }
  0x72   : > { %2318 = vmatprep.mubr.bf16.mxu0 %v2608_v12  ;;  %2326 = vmatprep.mubr.bf16.mxu1 %v2609_v13 }
  0x79   : > { %2319 = vmatmul.mubr.bf16.gmra.mxu0 %v2610_v14  ;;  %2327 = vmatmul.mubr.bf16.gmra.mxu1 %v2611_v15 }
 0x131   : > { %v2316_v17 = vpop.f32.mrf.mxu0  ;;  %v2324_v18 = vpop.f32.mrf.mxu1 }
 0x132   : > { %v577_v19 = vadd.f32 %v2316_v17, %v2066_v16  ;;  %v609_v20 = vadd.f32 %v2324_v18, %v2066_v16 }
 0x133   : > { %v568_v21 = vpop.f32.mrf.mxu0  ;;  %v600_v22 = vpop.f32.mrf.mxu1 }
 0x134   : > { %v633_v23 = vmax.f32 %v577_v19, 0.0  ;;  %v641_v24 = vmax.f32 %v609_v20, 0.0  ;;  %v569_v25 = vadd.f32 %v2066_v16, %v568_v21  ;;  %v601_v26 = vadd.f32 %v2066_v16, %v600_v22 }
 0x135   : > { %v2317_v27 = vpop.f32.mrf.mxu0  ;;  %v2325_v28 = vpop.f32.mrf.mxu1 }
 0x136   : > { %649 = vst [vmem:[#allocation2 + $0x58] sm:$0xff] %v633_v23  ;;  %657 = vst [vmem:[#allocation2 + $0x10] sm:$0xff] %v641_v24  ;;  %v631_v29 = vmax.f32 %v569_v25, 0.0  ;;  %v639_v30 = vmax.f32 %v601_v26, 0.0  ;;  %v580_v31 = vadd.f32 %v2317_v27, %v2066_v16  ;;  %v612_v32 = vadd.f32 %v2325_v28, %v2066_v16 }
 0x137   : > { %v571_v33 = vpop.f32.mrf.mxu0  ;;  %v603_v34 = vpop.f32.mrf.mxu1 }
 0x138   : > { %647 = vst [vmem:[#allocation2 + $0x30] sm:$0xff] %v631_v29  ;;  %655 = vst [vmem:[#allocation2 + $0x40] sm:$0xff] %v639_v30  ;;  %v634_v35 = vmax.f32 %v580_v31, 0.0  ;;  %v642_v36 = vmax.f32 %v612_v32, 0.0  ;;  %v572_v37 = vadd.f32 %v2066_v16, %v571_v33  ;;  %v604_v38 = vadd.f32 %v2066_v16, %v603_v34 }
 0x139   : > { %v2320_v39 = vpop.f32.mrf.mxu0  ;;  %v2328_v40 = vpop.f32.mrf.mxu1 }
 0x13a   : > { %650 = vst [vmem:[#allocation2 + $0x18] sm:$0xff] %v634_v35  ;;  %658 = vst [vmem:[#allocation2 + $0x38] sm:$0xff] %v642_v36  ;;  %v632_v41 = vmax.f32 %v572_v37, 0.0  ;;  %v640_v42 = vmax.f32 %v604_v38, 0.0  ;;  %v593_v43 = vadd.f32 %v2320_v39, %v2066_v16  ;;  %v625_v44 = vadd.f32 %v2328_v40, %v2066_v16 }
 0x13b   : > { %v584_v45 = vpop.f32.mrf.mxu0  ;;  %v616_v46 = vpop.f32.mrf.mxu1 }
 0x13c   : > { %648 = vst [vmem:[#allocation2] sm:$0xff] %v632_v41  ;;  %656 = vst [vmem:[#allocation2 + $0x20] sm:$0xff] %v640_v42  ;;  %v637_v47 = vmax.f32 %v593_v43, 0.0  ;;  %v645_v48 = vmax.f32 %v625_v44, 0.0  ;;  %v585_v49 = vadd.f32 %v2066_v16, %v584_v45  ;;  %v617_v50 = vadd.f32 %v2066_v16, %v616_v46 }
 0x13d   : > { %v2321_v51 = vpop.f32.mrf.mxu0  ;;  %v2329_v52 = vpop.f32.mrf.mxu1 }
 0x13e   : > { %653 = vst [vmem:[#allocation2 + $0x8] sm:$0xff] %v637_v47  ;;  %661 = vst [vmem:[#allocation2 + $0x78] sm:$0xff] %v645_v48  ;;  %v635_v53 = vmax.f32 %v585_v49, 0.0  ;;  %v643_v54 = vmax.f32 %v617_v50, 0.0  ;;  %v596_v55 = vadd.f32 %v2321_v51, %v2066_v16  ;;  %v628_v56 = vadd.f32 %v2329_v52, %v2066_v16 }
 0x13f   : > { %v587_v57 = vpop.f32.mrf.mxu0  ;;  %v619_v58 = vpop.f32.mrf.mxu1 }
 0x140   : > { %651 = vst [vmem:[#allocation2 + $0x50] sm:$0xff] %v635_v53  ;;  %659 = vst [vmem:[#allocation2 + $0x60] sm:$0xff] %v643_v54  ;;  %v638_v59 = vmax.f32 %v596_v55, 0.0  ;;  %v646_v60 = vmax.f32 %v628_v56, 0.0  ;;  %v588_v61 = vadd.f32 %v2066_v16, %v587_v57  ;;  %v620_v62 = vadd.f32 %v2066_v16, %v619_v58 }
 0x142   : > { %654 = vst [vmem:[#allocation2 + $0x48] sm:$0xff] %v638_v59  ;;  %662 = vst [vmem:[#allocation2 + $0x28] sm:$0xff] %v646_v60  ;;  %v636_v63 = vmax.f32 %v588_v61, 0.0  ;;  %v644_v0 = vmax.f32 %v620_v62, 0.0 }
 0x144   : > { %652 = vst [vmem:[#allocation2 + $0x68] sm:$0xff] %v636_v63  ;;  %660 = vst [vmem:[#allocation2 + $0x70] sm:$0xff] %v644_v0 }
 0x145 PF: > { %v714_v1 = vld [vmem:[#allocation2 + $0x78] sm:$0xff]  ;;  %v2813_v6 = vmov 0   ;;  %v710_v8 = vld [vmem:[#allocation2 + $0x10] sm:$0xff]  ;;  %v708_v12 = vld [vmem:[#allocation2 + $0x40] sm:$0xff]  ;;  %s3380_s2 = sld [smem:[#allocation17_spill]]  ;;  %s2814_s30 = smov [#allocation10]  }
 0x146   : > { %2613 = vset.pattern.permute.xlu1 %v2813_v6  ;;  %2612 = vset.pattern.permute.xlu0 %v2813_v6  ;;  %v711_v9 = vld [vmem:[#allocation2 + $0x38] sm:$0xff]  ;;  %v700_v10 = vld [vmem:[#allocation2 + $0x30] sm:$0xff]  ;;  %v701_v13 = vld [vmem:[#allocation2] sm:$0xff]  ;;  %p2536_p7 = scmp.eq.s32.totalorder %s2891_s11, 2 }
 0x147   : > { %v712_v3 = vld [vmem:[#allocation2 + $0x60] sm:$0xff]  ;;  %v3041_v11 = vpack.c.bf16 %v711_v9, %v710_v8  ;;  %v3052_v19 = vpack.c.bf16 %v701_v13, %v700_v10  ;;  %v706_v23 = vld [vmem:[#allocation2 + $0x8] sm:$0xff]  ;;  %v704_v28 = vld [vmem:[#allocation2 + $0x50] sm:$0xff] }
 0x148   : > { %v3043_v14 = vld [vmem:[#allocation7] sm:$0xff]  ;;  %v702_v33 = vld [vmem:[#allocation2 + $0x58] sm:$0xff]  ;;  %v2615_v38 = vld [vmem:[%s3005_s27 + $0x30] sm:$0xff]  }
 0x149   : > { %v715_v2 = vld [vmem:[#allocation2 + $0x28] sm:$0xff]  ;;  %v709_v15 = vld [vmem:[#allocation2 + $0x20] sm:$0xff]  ;;  %v732_v16 = vunpack.c.l.s8.bf16 %v3043_v14  ;;  %2394 = vmatprep.mubr.bf16.mxu1 %v3052_v19  ;;  %v703_v34 = vld [vmem:[#allocation2 + $0x18] sm:$0xff]  ;;  %v733_v48 = vunpack.c.h.s8.bf16 %v3043_v14 }
 0x14a   : > { %v3034_v4 = vpack.c.bf16 %v715_v2, %v714_v1  ;;  %v3062_v22 = vpack.c.bf16 %v709_v15, %v708_v12  ;;  %v707_v24 = vld [vmem:[#allocation2 + $0x48] sm:$0xff]  ;;  %v2614_v37 = vld [vmem:[%s3005_s27 + $0x38] sm:$0xff]   ;;  %v3095_v39 = vpack.c.bf16 %v703_v34, %v702_v33  ;;  %v2617_v45 = vld [vmem:[%s3005_s27 + $0x20] sm:$0xff]  }
 0x14b   : > { %v713_v5 = vld [vmem:[#allocation2 + $0x70] sm:$0xff]  ;;  %v1216_v18 = vld [vmem:[%s3380_s2] sm:$0xff]  ;;  %2346 = vmatprep.mubr.bf16.mxu0 %v732_v16  ;;  %v1219_v20 = vld [vmem:[%s3380_s2 + $0x18] sm:$0xff]  ;;  %v3073_v27 = vpack.c.bf16 %v707_v24, %v706_v23  ;;  %2378 = vmatprep.subr.bf16.mxu1 %v2614_v37 }
 0x14c   : > { %v3036_v7 = vpack.c.bf16 %v713_v5, %v712_v3  ;;  %2330 = vmatprep.subr.bf16.mxu0 %v3034_v4  ;;  %v1218_v17 = vld [vmem:[%s3380_s2 + $0x10] sm:$0xff]  ;;  %1234 = vperm.xlu0 %2612, %v1216_v18   ;;  %v1217_v21 = vld [vmem:[%s3380_s2 + $0x8] sm:$0xff]  ;;  %v1220_v26 = vld [vmem:[%s3380_s2 + $0x20] sm:$0xff] }
 0x14d   : > { %2331 = vmatpush3.bf16.msra.mxu0 %v3034_v4  ;;  %1244 = vperm.xlu1 %2613, %v1218_v17   ;;  %v1221_v25 = vld [vmem:[%s3380_s2 + $0x28] sm:$0xff]  ;;  %v1223_v30 = vld [vmem:[%s3380_s2 + $0x38] sm:$0xff]  ;;  %v1222_v31 = vld [vmem:[%s3380_s2 + $0x30] sm:$0xff] }
 0x14e   : > { %2332 = vmatprep.subr.bf16.mxu0 %v3036_v7  ;;  %v705_v29 = vld [vmem:[#allocation2 + $0x68] sm:$0xff]  ;;  %v1224_v36 = vld [vmem:[%s3380_s2 + $0x40] sm:$0xff]  ;;  %v1227_v40 = vld [vmem:[%s3380_s2 + $0x58] sm:$0xff]  ;;  %2379 = vmatpush3.bf16.msra.mxu1 %v2614_v37 }
 0x14f   : > { %v3083_v32 = vpack.c.bf16 %v705_v29, %v704_v28  ;;  %v1225_v35 = vld [vmem:[%s3380_s2 + $0x48] sm:$0xff]  ;;  %v1226_v41 = vld [vmem:[%s3380_s2 + $0x50] sm:$0xff]  ;;  %2380 = vmatprep.subr.bf16.mxu1 %v2615_v38  ;;  %v1228_v44 = vld [vmem:[%s3380_s2 + $0x60] sm:$0xff] }
 0x150   : > { %1239 = vperm.xlu0 %2612, %v1217_v21   ;;  %v2616_v42 = vld [vmem:[%s3005_s27 + $0x28] sm:$0xff]   ;;  %v1231_v47 = vld [vmem:[%s3380_s2 + $0x78] sm:$0xff]  ;;  %v1230_v49 = vld [vmem:[%s3380_s2 + $0x70] sm:$0xff] }
 0x151   : > { %2333 = vmatpush3.bf16.msra.mxu0 %v3036_v7  ;;  %1249 = vperm.xlu1 %2613, %v1219_v20   ;;  %v1229_v43 = vld [vmem:[%s3380_s2 + $0x68] sm:$0xff]  ;;  %v2618_v50 = vld [vmem:[%s3005_s27 + $0x18] sm:$0xff]   ;;  %v2619_v53 = vld [vmem:[%s3005_s27 + $0x10] sm:$0xff]  }
 0x152   : > { %2334 = vmatprep.subr.bf16.mxu0 %v3041_v11  ;;  %2381 = vmatpush3.bf16.msra.mxu1 %v2615_v38  ;;  %v725_v46 = vld [vmem:[#allocation7 + $0x8] sm:$0xff]  ;;  %v726_v54 = vld [vmem:[#allocation7 + $0x10] sm:$0xff]  ;;  %v1529_v55 = vld [vmem:[%s3380_s2 + $0x80] sm:$0xff] }
 0x153   : > { %2382 = vmatprep.subr.bf16.mxu1 %v2616_v42  ;;  %v734_v51 = vunpack.c.l.s8.bf16 %v725_v46  ;;  %v1530_v52 = vld [vmem:[%s3380_s2 + $0x88] sm:$0xff]  ;;  %v735_v56 = vunpack.c.h.s8.bf16 %v725_v46  ;;  %v736_v57 = vunpack.c.l.s8.bf16 %v726_v54  ;;  %v1537_v59 = vld [vmem:[%s3380_s2 + $0xc0] sm:$0xff]  ;;  %v1532_v62 = vld [vmem:[%s3380_s2 + $0x98] sm:$0xff]  ;;  %v737_v1 = vunpack.c.h.s8.bf16 %v726_v54 }
 0x154   : > { %1254 = vperm.xlu0 %2612, %v1220_v26   ;;  %v1538_v58 = vld [vmem:[%s3380_s2 + $0xc8] sm:$0xff]  ;;  %v2621_v61 = vld [vmem:[%s3005_s27] sm:$0xff]   ;;  %v727_v63 = vld [vmem:[#allocation7 + $0x18] sm:$0xff] }
 0x155   : > { %2335 = vmatpush3.bf16.msra.mxu0 %v3041_v11  ;;  %1259 = vperm.xlu1 %2613, %v1221_v25   ;;  %v2620_v60 = vld [vmem:[%s3005_s27 + $0x8] sm:$0xff]   ;;  %v1531_v0 = vld [vmem:[%s3380_s2 + $0x90] sm:$0xff]  ;;  %v738_v2 = vunpack.c.l.s8.bf16 %v727_v63  ;;  %v1540_v3 = vld [vmem:[%s3380_s2 + $0xd8] sm:$0xff]  ;;  %v739_v13 = vunpack.c.h.s8.bf16 %v727_v63 }
 0x156   : > { %2336 = vmatprep.subr.bf16.mxu0 %v3062_v22  ;;  %2383 = vmatpush3.bf16.msra.mxu1 %v2616_v42  ;;  %v1539_v5 = vld [vmem:[%s3380_s2 + $0xd0] sm:$0xff]  ;;  %v2622_v6 = vld [vmem:[%s2986_s18 + $0x38] sm:$0xff]   ;;  %v1534_v9 = vld [vmem:[%s3380_s2 + $0xa8] sm:$0xff] }
 0x157   : > { %2384 = vmatprep.subr.bf16.mxu1 %v2617_v45  ;;  %v2623_v8 = vld [vmem:[%s2986_s18 + $0x30] sm:$0xff]   ;;  %v728_v10 = vld [vmem:[#allocation7 + $0x20] sm:$0xff]  ;;  %v3162_v14 = vld [vmem:[%s2986_s18 + $0x78] sm:$0xff]  }
 0x158   : > { %1264 = vperm.xlu0 %2612, %v1222_v31   ;;  %v1533_v12 = vld [vmem:[%s3380_s2 + $0xa0] sm:$0xff]  ;;  %v740_v15 = vunpack.c.l.s8.bf16 %v728_v10  ;;  %v1542_v16 = vld [vmem:[%s3380_s2 + $0xe8] sm:$0xff]  ;;  %v1536_v20 = vld [vmem:[%s3380_s2 + $0xb8] sm:$0xff]  ;;  %v741_v24 = vunpack.c.h.s8.bf16 %v728_v10 }
 0x159   : > { %2337 = vmatpush3.bf16.msra.mxu0 %v3062_v22  ;;  %1269 = vperm.xlu1 %2613, %v1223_v30   ;;  %v1541_v17 = vld [vmem:[%s3380_s2 + $0xe0] sm:$0xff]  ;;  %v2624_v18 = vld [vmem:[%s2986_s18 + $0x28] sm:$0xff]   ;;  %v1535_v23 = vld [vmem:[%s3380_s2 + $0xb0] sm:$0xff] }
 0x15a   : > { %2338 = vmatprep.subr.bf16.mxu0 %v3073_v27  ;;  %2385 = vmatpush3.bf16.msra.mxu1 %v2617_v45  ;;  %v729_v21 = vld [vmem:[#allocation7 + $0x28] sm:$0xff]  ;;  %v1544_v26 = vld [vmem:[%s3380_s2 + $0xf8] sm:$0xff]  ;;  %v1543_v28 = vld [vmem:[%s3380_s2 + $0xf0] sm:$0xff] }
 0x15b   : > { %2386 = vmatprep.subr.bf16.mxu1 %v2618_v50  ;;  %v742_v25 = vunpack.c.l.s8.bf16 %v729_v21  ;;  %v2627_v29 = vld [vmem:[%s2986_s18 + $0x18] sm:$0xff]   ;;  %v2628_v34 = vld [vmem:[%s2986_s18 + $0x10] sm:$0xff]   ;;  %v3207_v37 = vld [vmem:[%s2986_s18 + $0x60] sm:$0xff]  }
 0x15c   : > { %1274 = vperm.xlu0 %2612, %v1224_v36   ;;  %v731_v31 = vld [vmem:[#allocation7 + $0x38] sm:$0xff]  ;;  %v3202_v36 = vld [vmem:[%s2986_s18 + $0x68] sm:$0xff]  }
 0x15d   : > { %2339 = vmatpush3.bf16.msra.mxu0 %v3073_v27  ;;  %1279 = vperm.xlu1 %2613, %v1225_v35   ;;  %v746_v33 = vunpack.c.l.s8.bf16 %v731_v31  ;;  %v3195_v35 = vld [vmem:[%s2986_s18 + $0x70] sm:$0xff]   ;;  %v3212_v38 = vld [vmem:[%s2986_s18 + $0x58] sm:$0xff]  }
 0x15e   : > { %2340 = vmatprep.subr.bf16.mxu0 %v3083_v32  ;;  %2387 = vmatpush3.bf16.msra.mxu1 %v2618_v50 }
 0x15f   : > { %2388 = vmatprep.subr.bf16.mxu1 %v2619_v53 }
 0x160   : > { %1284 = vperm.xlu0 %2612, %v1226_v41   ;;  %v3227_v41 = vld [vmem:[%s2986_s18 + $0x40] sm:$0xff]  }
 0x161   : > { %2341 = vmatpush3.bf16.msra.mxu0 %v3083_v32  ;;  %1289 = vperm.xlu1 %2613, %v1227_v40   ;;  %v3222_v40 = vld [vmem:[%s2986_s18 + $0x48] sm:$0xff]  }
 0x162   : > { %2342 = vmatprep.subr.bf16.mxu0 %v3095_v39  ;;  %2389 = vmatpush3.bf16.msra.mxu1 %v2619_v53 }
 0x163   : > { %2390 = vmatprep.subr.bf16.mxu1 %v2620_v60 }
 0x164   : > { %1294 = vperm.xlu0 %2612, %v1228_v44  }
 0x165   : > { %2343 = vmatpush3.bf16.msra.mxu0 %v3095_v39  ;;  %1299 = vperm.xlu1 %2613, %v1229_v43  }
 0x166   : > { %2344 = vmatprep.subr.bf16.mxu0 %v3052_v19  ;;  %2391 = vmatpush3.bf16.msra.mxu1 %v2620_v60 }
 0x167   : > { %2392 = vmatprep.subr.bf16.mxu1 %v2621_v61 }
 0x168   : > { %1304 = vperm.xlu0 %2612, %v1230_v49  }
 0x169   : > { %2345 = vmatpush3.bf16.msra.mxu0 %v3052_v19  ;;  %1309 = vperm.xlu1 %2613, %v1231_v47   ;;  %v2625_v19 = vld [vmem:[%s2986_s18 + $0x20] sm:$0xff]  }
 0x16a   : > { %2393 = vmatpush3.bf16.msra.mxu1 %v2621_v61  ;;  %2442 = vmatprep.subr.bf16.mxu0 %v3162_v14 }
 0x16b   : > { %2410 = vmatprep.subr.bf16.mxu1 %v2622_v6 }
 0x16c   : > { %2347 = vmatmul.mubr.bf16.vlgmr.msra.gmra.mxu0 %v733_v48  ;;  %1547 = vperm.xlu0 %2612, %v1529_v55  }
 0x16d   : > { %2350 = vmatprep.mubr.bf16.mxu0 %v734_v51  ;;  %1552 = vperm.xlu1 %2613, %v1530_v52  }
 0x16e   : > { %2395 = vmatmul.mubr.bf16.vlgmr.msra.gmra.mxu1 %v3095_v39  ;;  %2443 = vmatpush3.bf16.msra.mxu0 %v3162_v14  ;;  %v3217_v39 = vld [vmem:[%s2986_s18 + $0x50] sm:$0xff]  }
 0x16f   : > { %2411 = vmatpush3.bf16.msra.mxu1 %v2622_v6  ;;  %2398 = vmatprep.mubr.bf16.mxu1 %v3083_v32 }
 0x170   : > { %1587 = vperm.xlu0 %2612, %v1537_v59   ;;  %2412 = vmatprep.subr.bf16.mxu1 %v2623_v8 }
 0x171   : > { %1592 = vperm.xlu1 %2613, %v1538_v58   ;;  %2444 = vmatprep.subr.bf16.mxu0 %v3195_v35 }
 0x172   : > { %2445 = vmatpush3.bf16.msra.mxu0 %v3195_v35 }
 0x173   : > { %2413 = vmatpush3.bf16.msra.mxu1 %v2623_v8  ;;  %2446 = vmatprep.subr.bf16.mxu0 %v3202_v36 }
 0x174   : > { %2351 = vmatmul.mubr.bf16.gmra.mxu0 %v735_v56  ;;  %1557 = vperm.xlu0 %2612, %v1531_v0  }
 0x175   : > { %2354 = vmatprep.mubr.bf16.mxu0 %v736_v57  ;;  %1562 = vperm.xlu1 %2613, %v1532_v62  }
 0x176   : > { %2399 = vmatmul.mubr.bf16.gmra.mxu1 %v3073_v27  ;;  %2414 = vmatprep.subr.bf16.mxu1 %v2624_v18  ;;  %v743_v27 = vunpack.c.h.s8.bf16 %v729_v21 }
 0x177   : > { %2415 = vmatpush3.bf16.msra.mxu1 %v2624_v18  ;;  %2402 = vmatprep.mubr.bf16.mxu1 %v3062_v22  ;;  %v730_v22 = vld [vmem:[#allocation7 + $0x30] sm:$0xff] }
 0x178   : > { %1597 = vperm.xlu0 %2612, %v1539_v5   ;;  %2416 = vmatprep.subr.bf16.mxu1 %v2625_v19  ;;  %v744_v30 = vunpack.c.l.s8.bf16 %v730_v22  ;;  %v745_v32 = vunpack.c.h.s8.bf16 %v730_v22 }
 0x179   : > { %1602 = vperm.xlu1 %2613, %v1540_v3   ;;  %2447 = vmatpush3.bf16.msra.mxu0 %v3202_v36 }
 0x17a   : > { %2448 = vmatprep.subr.bf16.mxu0 %v3207_v37 }
 0x17b   : > { %2417 = vmatpush3.bf16.msra.mxu1 %v2625_v19 }
 0x17c   : > { %2355 = vmatmul.mubr.bf16.gmra.mxu0 %v737_v1  ;;  %1567 = vperm.xlu0 %2612, %v1533_v12  }
 0x17d   : > { %2358 = vmatprep.mubr.bf16.mxu0 %v738_v2  ;;  %1572 = vperm.xlu1 %2613, %v1534_v9  }
 0x17e   : > { %2403 = vmatmul.mubr.bf16.gmra.mxu1 %v3041_v11  ;;  %2418 = vmatprep.subr.bf16.mxu1 %v2627_v29  ;;  %v747_v11 = vunpack.c.h.s8.bf16 %v731_v31 }
 0x17f   : > { %2419 = vmatpush3.bf16.msra.mxu1 %v2627_v29  ;;  %2406 = vmatprep.mubr.bf16.mxu1 %v3036_v7  ;;  %v2630_v7 = vld [vmem:[%s2986_s18 + $0x8] sm:$0xff]  }
 0x180   : > { %1607 = vperm.xlu0 %2612, %v1541_v17   ;;  %2420 = vmatprep.subr.bf16.mxu1 %v2628_v34 }
 0x181   : > { %1612 = vperm.xlu1 %2613, %v1542_v16   ;;  %2449 = vmatpush3.bf16.msra.mxu0 %v3207_v37 }
 0x182   : > { %2450 = vmatprep.subr.bf16.mxu0 %v3212_v38 }
 0x183   : > { %2421 = vmatpush3.bf16.msra.mxu1 %v2628_v34 }
 0x184   : > { %2359 = vmatmul.mubr.bf16.gmra.mxu0 %v739_v13  ;;  %1577 = vperm.xlu0 %2612, %v1535_v23  }
 0x185   : > { %2362 = vmatprep.mubr.bf16.mxu0 %v740_v15  ;;  %1582 = vperm.xlu1 %2613, %v1536_v20  }
 0x186   : > { %2407 = vmatmul.mubr.bf16.gmra.mxu1 %v3034_v4  ;;  %2422 = vmatprep.subr.bf16.mxu1 %v2630_v7  ;;  %v2631_v4 = vld [vmem:[%s2986_s18] sm:$0xff]  }
 0x187   : > { %2423 = vmatpush3.bf16.msra.mxu1 %v2630_v7  ;;  %2451 = vmatpush3.bf16.msra.mxu0 %v3212_v38 }
 0x188   : > { %1617 = vperm.xlu0 %2612, %v1543_v28   ;;  %2424 = vmatprep.subr.bf16.mxu1 %v2631_v4 }
 0x189   : > { %1622 = vperm.xlu1 %2613, %v1544_v26   ;;  %2452 = vmatprep.subr.bf16.mxu0 %v3217_v39 }
 0x18b   : > { %2425 = vmatpush3.bf16.msra.mxu1 %v2631_v4  ;;  %2453 = vmatpush3.bf16.msra.mxu0 %v3217_v39 }
 0x18c   : > { %2363 = vmatmul.mubr.bf16.gmra.mxu0 %v741_v24  ;;  %2490 = vmatprep.subr.bf16.mxu1 %v3162_v14 }
 0x18d   : > { %2366 = vmatprep.mubr.bf16.mxu0 %v742_v25  ;;  %2454 = vmatprep.subr.bf16.mxu0 %v3222_v40 }
 0x18f   : > { %2455 = vmatpush3.bf16.msra.mxu0 %v3222_v40 }
 0x190   : > { %2456 = vmatprep.subr.bf16.mxu0 %v3227_v41 }
 0x193   : > { %2457 = vmatpush3.bf16.msra.mxu0 %v3227_v41 }
 0x194   : > { %2367 = vmatmul.mubr.bf16.gmra.mxu0 %v743_v27 }
 0x195   : > { %2370 = vmatprep.mubr.bf16.mxu0 %v744_v30 }
 0x19c   : > { %2371 = vmatmul.mubr.bf16.gmra.mxu0 %v745_v32 }
 0x19d   : > { %2374 = vmatprep.mubr.bf16.mxu0 %v746_v33 }
 0x1a4   : > { %2375 = vmatmul.mubr.bf16.gmra.mxu0 %v747_v11 }
 0x1c7   : > { %v1235_v43 = vpop.permute.xlu0 %1234 }
 0x1c8   : > { %v1245_v42 = vpop.permute.xlu1 %1244 }
 0x1cb   : > { %v1240_v45 = vpop.permute.xlu0 %1239 }
 0x1cc   : > { %v1250_v44 = vpop.permute.xlu1 %1249 }
 0x1cf   : > { %v1255_v47 = vpop.permute.xlu0 %1254 }
 0x1d0   : > { %v1260_v46 = vpop.permute.xlu1 %1259 }
 0x1d3   : > { %v1265_v49 = vpop.permute.xlu0 %1264 }
 0x1d4   : > { %v1270_v48 = vpop.permute.xlu1 %1269 }
 0x1d7   : > { %v1275_v51 = vpop.permute.xlu0 %1274 }
 0x1d8   : > { %v1280_v50 = vpop.permute.xlu1 %1279 }
 0x1db   : > { %v1285_v53 = vpop.permute.xlu0 %1284 }
 0x1dc   : > { %v1290_v52 = vpop.permute.xlu1 %1289 }
 0x1df   : > { %v1295_v55 = vpop.permute.xlu0 %1294 }
 0x1e0   : > { %v3231_v54 = vpop.permute.xlu1 %1299 }
 0x1e3   : > { %v1305_v60 = vpop.permute.xlu0 %1304 }
 0x1e4   : > { %v1310_v58 = vpop.permute.xlu1 %1309 }
 0x1e7   : > { %v3235_v9 = vpop.permute.xlu0 %1547 }
 0x1e8   : > { %v3233_v3 = vpop.permute.xlu1 %1552 }
 0x1eb   : > { %v3241_v20 = vpop.permute.xlu0 %1587 }
 0x1ec   : > { %v3239_v15 = vpop.permute.xlu1 %1592 }
 0x1ef   : > { %v1558_v29 = vpop.permute.xlu0 %1557 }
 0x1f0   : > { %v1563_v25 = vpop.permute.xlu1 %1562 }
 0x1f4   : > { %v1603_v34 = vpop.permute.xlu1 %1602 }
 0x22c   : > { %v2348_v56 = vpop.f32.mrf.mxu0 }
 0x22d   : > { %v1314_v1 = vmul.f32 %v2348_v56, %v1245_v42 }
 0x22e   : > { %v814_v57 = vpop.f32.mrf.mxu0 }
 0x22f   : > { %v1312_v63 = vmul.f32 %v1235_v43, %v814_v57 }
 0x230   : > { %v2349_v59 = vpop.f32.mrf.mxu0 }
 0x231   : > { %v1315_v61 = vmul.f32 %v2349_v59, %v1250_v44 }
 0x232   : > { %v817_v62 = vpop.f32.mrf.mxu0 }
 0x233   : > { %v1313_v0 = vmul.f32 %v1240_v45, %v817_v62  ;;  %v1329_v6 = vpack.c.bf16 %v1315_v61, %v1314_v1  ;;  %v1573_v45 = vpop.permute.xlu1 %1572 }
 0x234   : > { %v2352_v2 = vpop.f32.mrf.mxu0 }
 0x235   : > { %v1328_v5 = vpack.c.bf16 %v1313_v0, %v1312_v63  ;;  %v1318_v18 = vmul.f32 %v2352_v2, %v1265_v49 }
 0x236   : > { %v830_v8 = vpop.f32.mrf.mxu0 }
 0x237   : > { %2426 = vmatprep.mubr.bf16.mxu1 %v1328_v5  ;;  %v1316_v16 = vmul.f32 %v1255_v47, %v830_v8 }
 0x238   : > { %v2353_v10 = vpop.f32.mrf.mxu0  ;;  %2427 = vmatmul.mubr.bf16.vlgmr.msra.gmra.mxu1 %v1329_v6 }
 0x239   : > { %2498 = vmatpush3.bf16.msra.mxu1 %v3162_v14  ;;  %v1319_v12 = vmul.f32 %v2353_v10, %v1270_v48 }
 0x23a   : > { %v833_v13 = vpop.f32.mrf.mxu0  ;;  %2491 = vmatprep.subr.bf16.mxu1 %v3195_v35 }
 0x23b   : > { %v1317_v17 = vmul.f32 %v1260_v46, %v833_v13  ;;  %v1331_v23 = vpack.c.bf16 %v1319_v12, %v1318_v18 }
 0x23c   : > { %v2356_v19 = vpop.f32.mrf.mxu0 }
 0x23d   : > { %v1330_v21 = vpack.c.bf16 %v1317_v17, %v1316_v16  ;;  %2499 = vmatpush3.bf16.msra.mxu1 %v3195_v35  ;;  %v1322_v30 = vmul.f32 %v2356_v19, %v1285_v53  ;;  %v1598_v35 = vpop.permute.xlu0 %1597 }
 0x23e   : > { %v846_v24 = vpop.f32.mrf.mxu0  ;;  %2492 = vmatprep.subr.bf16.mxu1 %v3202_v36 }
 0x23f   : > { %2430 = vmatprep.mubr.bf16.mxu1 %v1330_v21  ;;  %v1320_v22 = vmul.f32 %v1275_v51, %v846_v24 }
 0x240   : > { %v2357_v14 = vpop.f32.mrf.mxu0  ;;  %2431 = vmatmul.mubr.bf16.gmra.mxu1 %v1331_v23 }
 0x241   : > { %2500 = vmatpush3.bf16.msra.mxu1 %v3202_v36  ;;  %v1323_v26 = vmul.f32 %v2357_v14, %v1290_v52  ;;  %v1568_v49 = vpop.permute.xlu0 %1567  ;;  %v1613_v52 = vpop.permute.xlu1 %1612 }
 0x242   : > { %v849_v28 = vpop.f32.mrf.mxu0  ;;  %2493 = vmatprep.subr.bf16.mxu1 %v3207_v37 }
 0x243   : > { %v1321_v27 = vmul.f32 %v1280_v50, %v849_v28  ;;  %v1333_v33 = vpack.c.bf16 %v1323_v26, %v1322_v30 }
 0x244   : > { %v2360_v31 = vpop.f32.mrf.mxu0 }
 0x245   : > { %v1332_v32 = vpack.c.bf16 %v1321_v27, %v1320_v22  ;;  %2501 = vmatpush3.bf16.msra.mxu1 %v3207_v37  ;;  %v1326_v44 = vmul.f32 %v2360_v31, %v1305_v60  ;;  %v1608_v56 = vpop.permute.xlu0 %1607 }
 0x246   : > { %v862_v11 = vpop.f32.mrf.mxu0  ;;  %2494 = vmatprep.subr.bf16.mxu1 %v3212_v38 }
 0x247   : > { %2434 = vmatprep.mubr.bf16.mxu1 %v1332_v32  ;;  %v1324_v42 = vmul.f32 %v1295_v55, %v862_v11 }
 0x248   : > { %v2361_v7 = vpop.f32.mrf.mxu0  ;;  %2435 = vmatmul.mubr.bf16.gmra.mxu1 %v1333_v33 }
 0x249   : > { %2502 = vmatpush3.bf16.msra.mxu1 %v3212_v38  ;;  %v1327_v4 = vmul.f32 %v2361_v7, %v1310_v58  ;;  %v1578_v63 = vpop.permute.xlu0 %1577 }
 0x24a   : > { %v865_v36 = vpop.f32.mrf.mxu0  ;;  %2495 = vmatprep.subr.bf16.mxu1 %v3217_v39 }
 0x24b   : > { %v1325_v43 = vmul.f32 %v3231_v54, %v865_v36  ;;  %v1335_v47 = vpack.c.bf16 %v1327_v4, %v1326_v44 }
 0x24c   : > { %v2364_v37 = vpop.f32.mrf.mxu0 }
 0x24d   : > { %v1334_v46 = vpack.c.bf16 %v1325_v43, %v1324_v42  ;;  %2503 = vmatpush3.bf16.msra.mxu1 %v3217_v39  ;;  %v1627_v39 = vmul.f32 %v2364_v37, %v1558_v29  ;;  %v1618_v26 = vpop.permute.xlu0 %1617 }
 0x24e   : > { %v878_v48 = vpop.f32.mrf.mxu0  ;;  %2496 = vmatprep.subr.bf16.mxu1 %v3222_v40 }
 0x24f   : > { %2438 = vmatprep.mubr.bf16.mxu1 %v1334_v46  ;;  %v1625_v53 = vmul.f32 %v3235_v9, %v878_v48 }
 0x250   : > { %v2365_v38 = vpop.f32.mrf.mxu0  ;;  %2439 = vmatmul.mubr.bf16.gmra.mxu1 %v1335_v47 }
 0x251   : > { %2504 = vmatpush3.bf16.msra.mxu1 %v3222_v40  ;;  %v1628_v50 = vmul.f32 %v2365_v38, %v1563_v25  ;;  %v1583_v40 = vpop.permute.xlu1 %1582 }
 0x252   : > { %v881_v51 = vpop.f32.mrf.mxu0  ;;  %2497 = vmatprep.subr.bf16.mxu1 %v3227_v41 }
 0x253   : > { %v1626_v54 = vmul.f32 %v3233_v3, %v881_v51  ;;  %v1642_v58 = vpack.c.bf16 %v1628_v50, %v1627_v39  ;;  %v3282_v39 = vld [vmem:[%s391_s16] ss:$0 sm:$0xff]  ;;  %s1945_s16 = sshll.u32 %s2814_s30, 4  ;;  %s1946_s16 = int_to_ptr.vmem [resolvable:$true] %s1945_s16 }
 0x254   : > { %v2368_v55 = vpop.f32.mrf.mxu0  ;;  %s2718_s25 = scalar_lea.vmem %s1946_s16, 1024  ;;  %p2725_p11 = scmp.lt.s32.totalorder %s1946_s16, %s1946_s16 }
 0x255   : > { %v1641_v57 = vpack.c.bf16 %v1626_v54, %v1625_v53  ;;  %2505 = vmatpush3.bf16.msra.mxu1 %v3227_v41  ;;  %v1631_v2 = vmul.f32 %v2368_v55, %v1578_v63  ;;  %v1623_v24 = vpop.permute.xlu1 %1622  ;;  %p2719_p6 = scmp.ne.s32.totalorder %s1946_s16, %s2718_s25  ;;  %p2726_p0 = scmp.lt.s32.totalorder %s2718_s25, %s2718_s25 }
 0x256   : > { %v894_v59 = vpop.f32.mrf.mxu0 }
 0x257   : > { %2458 = vmatprep.mubr.bf16.mxu0 %v1641_v57  ;;  %v1629_v0 = vmul.f32 %v1568_v49, %v894_v59  ;;  %p2720_p5 = pnand %p2719_p6, %p2536_p7  ;;  %p2727_p1 = por %p2726_p0, %p2725_p11 }
 0x258   : > { %v2369_v60 = vpop.f32.mrf.mxu0  ;;  %2459 = vmatmul.mubr.bf16.vlgmr.msra.gmra.mxu0 %v1642_v58 }
 0x259   : > { %v1632_v61 = vmul.f32 %v2369_v60, %v1583_v40  ;;  %p2721_p3 = pneg %p2720_p5 }
 0x25a   : > { %v897_v62 = vpop.f32.mrf.mxu0 }
 0x25b   : > { %v1630_v1 = vmul.f32 %v1573_v45, %v897_v62  ;;  %v1644_v6 = vpack.c.bf16 %v1632_v61, %v1631_v2  ;;  %p2728_p2 = pnand %p2727_p1, %p2721_p3 }
 0x25c   : > { %v2372_v5 = vpop.f32.mrf.mxu0 }
 0x25d   : > { %v1643_v3 = vpack.c.bf16 %v1630_v1, %v1629_v0  ;;  %v1635_v16 = vmul.f32 %v2372_v5, %v1598_v35 }
 0x25e   : > { %v910_v8 = vpop.f32.mrf.mxu0 }
 0x25f   : > { %2462 = vmatprep.mubr.bf16.mxu0 %v1643_v3  ;;  %v1633_v12 = vmul.f32 %v3241_v20, %v910_v8 }
 0x260   : > { %v2373_v9 = vpop.f32.mrf.mxu0  ;;  %2463 = vmatmul.mubr.bf16.gmra.mxu0 %v1644_v6 }
 0x261   : > { %v1636_v41 = vmul.f32 %v2373_v9, %v1603_v34 }
 0x262   : > { %v913_v10 = vpop.f32.mrf.mxu0 }
 0x263   : > { %v1634_v13 = vmul.f32 %v3239_v15, %v913_v10  ;;  %v1646_v19 = vpack.c.bf16 %v1636_v41, %v1635_v16  ;;  %v2396_v15 = vpop.f32.mrf.mxu1 }
 0x264   : > { %v2376_v17 = vpop.f32.mrf.mxu0 }
 0x265   : > { %v1645_v18 = vpack.c.bf16 %v1634_v13, %v1633_v12  ;;  %v1639_v22 = vmul.f32 %v2376_v17, %v1618_v26  ;;  %v1137_v20 = vpop.f32.mrf.mxu1 }
 0x266   : > { %v926_v21 = vpop.f32.mrf.mxu0  ;;  %v1138_v58 = vadd.f32 %v3282_v39, %v1137_v20 }
 0x267   : > { %2466 = vmatprep.mubr.bf16.mxu1 %v1645_v18  ;;  %v1637_v28 = vmul.f32 %v1608_v56, %v926_v21  ;;  %v2397_v31 = vpop.f32.mrf.mxu1  ;;  %v1146_v56 = vadd.f32 %v2396_v15, %v3282_v39 }
 0x268   : > { %v2377_v23 = vpop.f32.mrf.mxu0  ;;  %2467 = vmatmul.mubr.bf16.vlgmr.msra.gmra.mxu1 %v1646_v19  ;;  %v1149_v40 = vadd.f32 %v2397_v31, %v3282_v39 }
 0x269   : > { %v1640_v14 = vmul.f32 %v2377_v23, %v1623_v24  ;;  %v1140_v32 = vpop.f32.mrf.mxu1 }
 0x26a   : > { %v929_v25 = vpop.f32.mrf.mxu0  ;;  %v1141_v1 = vadd.f32 %v3282_v39, %v1140_v32 }
 0x26b   : > { %v1638_v29 = vmul.f32 %v1613_v52, %v929_v25  ;;  %v1648_v30 = vpack.c.bf16 %v1640_v14, %v1639_v22  ;;  %v2400_v33 = vpop.f32.mrf.mxu1 }
 0x26c   : > { %v1162_v8 = vadd.f32 %v2400_v33, %v3282_v39 }
 0x26d   : > { %v1647_v27 = vpack.c.bf16 %v1638_v29, %v1637_v28  ;;  %v1153_v11 = vpop.f32.mrf.mxu1 }
 0x26e   : > { %v1154_v16 = vadd.f32 %v3282_v39, %v1153_v11 }
 0x26f   : > { %2470 = vmatprep.mubr.bf16.mxu1 %v1647_v27  ;;  %v2401_v34 = vpop.f32.mrf.mxu1 }
 0x270   : > { %2471 = vmatmul.mubr.bf16.gmra.mxu1 %v1648_v30  ;;  %v1165_v21 = vadd.f32 %v2401_v34, %v3282_v39 }
 0x271   : > { %v1156_v7 = vpop.f32.mrf.mxu1 }
 0x272   : > { %v1157_v28 = vadd.f32 %v3282_v39, %v1156_v7 }
 0x273   : > { %v3261_v35 = vpop.f32.mrf.mxu1 }
 0x274   : > { %v1178_v32 = vadd.f32 %v3261_v35, %v3282_v39 }
 0x275   : > { %v3263_v4 = vpop.f32.mrf.mxu1 }
 0x276   : > { %v1170_v7 = vadd.f32 %v3282_v39, %v3263_v4 }
 0x277   : > { %v3265_v36 = vpop.f32.mrf.mxu1 }
 0x279   : > { %v3267_v42 = vpop.f32.mrf.mxu1 }
 0x27b   : > { %v3269_v43 = vpop.f32.mrf.mxu1 }
 0x27d   : > { %v3271_v44 = vpop.f32.mrf.mxu1 }
 0x27f   : > { %v3273_v37 = vpop.f32.mrf.mxu1 }
 0x281   : > { %v3275_v45 = vpop.f32.mrf.mxu1 }
 0x2f8   : > { %v2428_v46 = vpop.f32.mrf.mxu1 }
 0x2f9   : > { %v1499_v59 = vadd.f32 %v2428_v46, %v1146_v56 }
 0x2fa   : > { %v1434_v47 = vpop.f32.mrf.mxu1 }
 0x2fb   : > { %v1497_v61 = vadd.f32 %v1434_v47, %v1138_v58 }
 0x2fc   : > { %v2429_v48 = vpop.f32.mrf.mxu1 }
 0x2fd   : > { %v1500_v2 = vadd.f32 %v2429_v48, %v1149_v40 }
 0x2fe   : > { %v1437_v49 = vpop.f32.mrf.mxu1 }
 0x2ff   : > { %v1498_v9 = vadd.f32 %v1437_v49, %v1141_v1 }
 0x300   : > { %v2432_v38 = vpop.f32.mrf.mxu1 }
 0x301   : > { %v1503_v17 = vadd.f32 %v2432_v38, %v1162_v8 }
 0x302   : > { %v1450_v50 = vpop.f32.mrf.mxu1 }
 0x303   : > { %v1501_v24 = vadd.f32 %v1450_v50, %v1154_v16  ;;  %v1181_v50 = vadd.f32 %v3265_v36, %v3282_v39  ;;  %v1194_v36 = vadd.f32 %v3269_v43, %v3282_v39 }
 0x304   : > { %v2433_v51 = vpop.f32.mrf.mxu1 }
 0x305   : > { %v1504_v27 = vadd.f32 %v2433_v51, %v1165_v21 }
 0x306   : > { %v1453_v52 = vpop.f32.mrf.mxu1 }
 0x307   : > { %v1502_v33 = vadd.f32 %v1453_v52, %v1157_v28 }
 0x308   : > { %v2436_v53 = vpop.f32.mrf.mxu1 }
 0x309   : > { %v1507_v48 = vadd.f32 %v2436_v53, %v1178_v32 }
 0x30a   : > { %v1466_v54 = vpop.f32.mrf.mxu1 }
 0x30b   : > { %v1505_v56 = vadd.f32 %v1466_v54, %v1170_v7 }
 0x30c   : > { %v3284_v55 = vpop.f32.mrf.mxu1 }
 0x30d   : > { %v1508_v40 = vadd.f32 %v3284_v55, %v1181_v50 }
 0x30e   : > { %v3287_v57 = vpop.f32.mrf.mxu1 }
 0x310   : > { %v3291_v63 = vpop.f32.mrf.mxu1 }
 0x311   : > { %v1511_v55 = vadd.f32 %v3291_v63, %v1194_v36 }
 0x312   : > { %v3295_v12 = vpop.f32.mrf.mxu1 }
 0x314   : > { %v2441_v29 = vpop.f32.mrf.mxu1 }
 0x316   : > { %v1485_v46 = vpop.f32.mrf.mxu1 }
 0x318   : > { %v2460_v60 = vpop.f32.mrf.mxu0 }
 0x319   : > { %v1813_v62 = vadd.f32 %v2460_v60, %v1499_v59  ;;  %v1173_v59 = vadd.f32 %v3282_v39, %v3267_v42  ;;  %v1186_v42 = vadd.f32 %v3282_v39, %v3271_v44 }
 0x31a   : > { %v1748_v0 = vpop.f32.mrf.mxu0 }
 0x31b   : > { %v1829_v5 = vmax.f32 %v1813_v62, 0.0  ;;  %v1811_v3 = vadd.f32 %v1748_v0, %v1497_v61  ;;  %v1506_v54 = vadd.f32 %v3287_v57, %v1173_v59  ;;  %v1509_v43 = vadd.f32 %v3295_v12, %v1186_v42 }
 0x31c   : > { %v2461_v6 = vpop.f32.mrf.mxu0 }
 0x31d   : > { %1845 = vst [vmem:[#allocation2 + $0x58] sm:$0xff] %v1829_v5  ;;  %v1827_v41 = vmax.f32 %v1811_v3, 0.0  ;;  %v1814_v10 = vadd.f32 %v2461_v6, %v1500_v2  ;;  %v1197_v6 = vadd.f32 %v3273_v37, %v3282_v39 }
 0x31e   : > { %v1751_v13 = vpop.f32.mrf.mxu0 }
 0x31f   : > { %1843 = vst [vmem:[#allocation2 + $0x30] sm:$0xff] %v1827_v41  ;;  %v1830_v18 = vmax.f32 %v1814_v10, 0.0  ;;  %v1812_v19 = vadd.f32 %v1751_v13, %v1498_v9  ;;  %v1189_v10 = vadd.f32 %v3282_v39, %v3275_v45  ;;  %v1512_v44 = vadd.f32 %v2441_v29, %v1197_v6 }
 0x320   : > { %v2464_v23 = vpop.f32.mrf.mxu0 }
 0x321   : > { %1846 = vst [vmem:[#allocation2 + $0x18] sm:$0xff] %v1830_v18  ;;  %v2171_v14 = vpack.c.bf16 %v1830_v18, %v1829_v5  ;;  %v1828_v25 = vmax.f32 %v1812_v19, 0.0  ;;  %v1817_v26 = vadd.f32 %v2464_v23, %v1503_v17  ;;  %v1510_v37 = vadd.f32 %v1485_v46, %v1189_v10 }
 0x322   : > { %v1764_v22 = vpop.f32.mrf.mxu0 }
 0x323   : > { %2203 = vst [vmem:[#allocation10 + $0x8] sm:$0xff] %v2171_v14   ;;  %1844 = vst [vmem:[#allocation2] sm:$0xff] %v1828_v25  ;;  %v2166_v30 = vpack.c.bf16 %v1828_v25, %v1827_v41  ;;  %v1833_v15 = vmax.f32 %v1817_v26, 0.0  ;;  %v1815_v20 = vadd.f32 %v1764_v22, %v1501_v24 }
 0x324   : > { %v2465_v31 = vpop.f32.mrf.mxu0 }
 0x325   : > { %2167 = vst [vmem:[#allocation10] sm:$0xff] %v2166_v30   ;;  %1849 = vst [vmem:[#allocation2 + $0x8] sm:$0xff] %v1833_v15  ;;  %v1831_v11 = vmax.f32 %v1815_v20, 0.0  ;;  %v1818_v34 = vadd.f32 %v2465_v31, %v1504_v27 }
 0x326   : > { %v1767_v47 = vpop.f32.mrf.mxu0 }
 0x327   : > { %1847 = vst [vmem:[#allocation2 + $0x50] sm:$0xff] %v1831_v11  ;;  %v1834_v49 = vmax.f32 %v1818_v34, 0.0  ;;  %v1816_v38 = vadd.f32 %v1767_v47, %v1502_v33 }
 0x328   : > { %v2468_v51 = vpop.f32.mrf.mxu1 }
 0x329   : > { %1850 = vst [vmem:[#allocation2 + $0x48] sm:$0xff] %v1834_v49  ;;  %v2181_v35 = vpack.c.bf16 %v1834_v49, %v1833_v15  ;;  %v1832_v52 = vmax.f32 %v1816_v38, 0.0  ;;  %v1821_v58 = vadd.f32 %v2468_v51, %v1507_v48 }
 0x32a   : > { %v1780_v60 = vpop.f32.mrf.mxu1 }
 0x32b   : > { %2205 = vst [vmem:[#allocation10 + $0x18] sm:$0xff] %v2181_v35   ;;  %1848 = vst [vmem:[#allocation2 + $0x68] sm:$0xff] %v1832_v52  ;;  %v2176_v4 = vpack.c.bf16 %v1832_v52, %v1831_v11  ;;  %v1837_v53 = vmax.f32 %v1821_v58, 0.0  ;;  %v1819_v61 = vadd.f32 %v1780_v60, %v1505_v56 }
 0x32c   : > { %v2469_v62 = vpop.f32.mrf.mxu1 }
 0x32d   : > { %2204 = vst [vmem:[#allocation10 + $0x10] sm:$0xff] %v2176_v4   ;;  %1853 = vst [vmem:[#allocation2 + $0x10] sm:$0xff] %v1837_v53  ;;  %v1835_v0 = vmax.f32 %v1819_v61, 0.0  ;;  %v1822_v1 = vadd.f32 %v2469_v62, %v1508_v40 }
 0x32e   : > { %v1783_v2 = vpop.f32.mrf.mxu1 }
 0x32f   : > { %1851 = vst [vmem:[#allocation2 + $0x40] sm:$0xff] %v1835_v0  ;;  %v1838_v5 = vmax.f32 %v1822_v1, 0.0  ;;  %v1820_v3 = vadd.f32 %v1783_v2, %v1506_v54 }
 0x330   : > { %v2472_v8 = vpop.f32.mrf.mxu1 }
 0x331   : > { %1854 = vst [vmem:[#allocation2 + $0x38] sm:$0xff] %v1838_v5  ;;  %v2191_v57 = vpack.c.bf16 %v1838_v5, %v1837_v53  ;;  %v1836_v9 = vmax.f32 %v1820_v3, 0.0  ;;  %v1825_v41 = vadd.f32 %v2472_v8, %v1511_v55 }
 0x332   : > { %v1796_v13 = vpop.f32.mrf.mxu1 }
 0x333   : > { %2207 = vst [vmem:[#allocation10 + $0x28] sm:$0xff] %v2191_v57   ;;  %1852 = vst [vmem:[#allocation2 + $0x20] sm:$0xff] %v1836_v9  ;;  %v2186_v63 = vpack.c.bf16 %v1836_v9, %v1835_v0  ;;  %v1841_v16 = vmax.f32 %v1825_v41, 0.0  ;;  %v1823_v17 = vadd.f32 %v1796_v13, %v1509_v43 }
 0x334   : > { %v2473_v18 = vpop.f32.mrf.mxu1 }
 0x335   : > { %2206 = vst [vmem:[#allocation10 + $0x20] sm:$0xff] %v2186_v63   ;;  %1857 = vst [vmem:[#allocation2 + $0x78] sm:$0xff] %v1841_v16  ;;  %v1839_v12 = vmax.f32 %v1823_v17, 0.0  ;;  %v1826_v19 = vadd.f32 %v2473_v18, %v1512_v44 }
 0x336   : > { %v1799_v21 = vpop.f32.mrf.mxu1 }
 0x337   : > { %1855 = vst [vmem:[#allocation2 + $0x60] sm:$0xff] %v1839_v12  ;;  %v1842_v23 = vmax.f32 %v1826_v19, 0.0  ;;  %v1824_v24 = vadd.f32 %v1799_v21, %v1510_v37 }
 0x339   : > { %1858 = vst [vmem:[#allocation2 + $0x28] sm:$0xff] %v1842_v23  ;;  %v2201_v45 = vpack.c.bf16 %v1842_v23, %v1841_v16  ;;  %v1840_v39 = vmax.f32 %v1824_v24, 0.0 }
 0x33b   : > { %2209 = vst [vmem:[#allocation10 + $0x38] sm:$0xff] %v2201_v45   ;;  %1856 = vst [vmem:[#allocation2 + $0x70] sm:$0xff] %v1840_v39  ;;  %v2196_v14 = vpack.c.bf16 %v1840_v39, %v1839_v12 }
 0x33d   : > { %2208 = vst [vmem:[#allocation10 + $0x30] sm:$0xff] %v2196_v14  }
 0x33e   : > { %2731 = shalt.err (!%p2728_p2)
}
 0x33f   : > { %s2815_s24 = smov 64   ;;  %s2816_s26 = smov 4  }
 0x340   : > { %s3381_s15 = sld [smem:[#allocation18_spill]] }
 0x346   : > { %2517 = dma.vmem_to_hbm [thread:$0]  (%p2536_p7), %s1946_s16, 1024, %s3381_s15, [#allocation6], %s2815_s24, %s2815_s24, %s2816_s26  }
 0x347   : > { %2779 = dma.done.wait (%p2536_p7), [#allocation6], 1024  }
 0x348   : > { %2781 = vsyncadd (%p2536_p7), [#allocation6], 4294966272 }
 0x349 PF: > { %s21_s10 = sadd.s32 1, %s2804_s10   ;;  %s3382_s27 = smov %s2788_s28 }
 0x34a   : > { %p18_p4 = scmp.ge.s32.totalorder %s21_s10, 5   ;;  %s3383_s28 = smov %s2792_s29 }
 0x34b   : > { %s3384_s29 = smov %s2972_s20  ;;  %s3385_s30 = smov %s2800_s9 }
 0x34c   : > { %s3386_s9 = smov %s3388_s22  ;;  %20 = sbr.rel (!%p18_p4) target bundleno = 10 (0xa), region = 117 }
 0x351   :  { %1961 = vsyncpa [#allocation5], 1 }
 0x352   :  { %1963 = vsyncpa [#allocation5 + $0x1], 1 }
 0x353   :  { %1964 = vsyncpa [#allocation8], 1 }
 0x354   :  { %1965 = vsyncpa [#allocation6], 1 }
 0x355   :  { %1967 = vsyncpa [#allocation6 + $0x1], 1 }

</bundles_post_ra>
